<compile_context>
chip_gen: v5e
topology: v5e:2x2
jax: 0.10.0
libtpu: 0.0.40
codegen_flags: <defaults>
</compile_context>

<pallas_src>
import jax
import jax.numpy as jnp
from jax.experimental import pallas as pl

HIDDEN = 32          # hidden_size
OUTPUT = 32          # output_size (== embedding dim == hidden_size, see note above)
MAX_LENGTH = 8       # encoder sequence length

PW = 128             # single lane tile: slab / activation / packed-output width
NEG = -1.0e30        # softmax / log_softmax lane-padding mask value

# bf16 weight-slab row offsets (multiples of 16 -> aligned to bf16 (16,128) packing).
ATTN_W_OFF = 0        # (2H, PW)  cols [0:MAX_LENGTH) = attn.weight^T
COMB_W_OFF = 64       # (2H, PW)  cols [0:HIDDEN)     = attn_combine.weight^T
GRU_W_OFF = 128       # (2H, PW)  r/z-combined GRU repack (see header)
OUT_W_OFF = 192       # (H,  PW)  cols [0:OUTPUT)     = out.weight^T
SLAB_ROWS = 224

# f32 bias-block rows.
ATTN_B_ROW = 0        # cols [0:MAX_LENGTH) = attn.bias, rest = NEG (softmax mask)
COMB_B_ROW = 1        # cols [0:HIDDEN)     = attn_combine.bias
GRU_B_ROW = 2         # [b_ir+b_hr | b_iz+b_hz | b_in | b_hn]
OUT_B_ROW = 3         # cols [0:OUTPUT)     = out.bias, rest = NEG (log_softmax mask)
BIAS_ROWS = 8


def _attn_decoder_kernel(w_ref, b_ref, emb_ref, h0_ref, enc_ref, out_ref):
    """Fused T-step decode.

    w_ref:   (SLAB_ROWS, PW) bf16   packed weights (resident in VMEM)
    b_ref:   (BIAS_ROWS, PW) f32    packed biases / softmax lane masks
    emb_ref: (T, HIDDEN)     bf16   pre-gathered embeddings for the token sequence
    h0_ref:  (1, HIDDEN)     f32    initial hidden state
    enc_ref: (PW, HIDDEN)    bf16   encoder outputs, rows >= MAX_LENGTH are zero
    out_ref: (T, PW)         f32    per-step packed row [logp(32)|h(32)|attn(8)|0(56)]
    """
    f32 = jnp.float32
    bf16 = jnp.bfloat16
    H = HIDDEN
    T = out_ref.shape[0]

    # Loop-invariant operands: loaded once, stay in vregs/VMEM across the unrolled loop.
    w_attn = w_ref[ATTN_W_OFF:ATTN_W_OFF + 2 * H, :]
    w_comb = w_ref[COMB_W_OFF:COMB_W_OFF + 2 * H, :]
    w_gru = w_ref[GRU_W_OFF:GRU_W_OFF + 2 * H, :]
    w_out = w_ref[OUT_W_OFF:OUT_W_OFF + H, :]
    b_attn = b_ref[ATTN_B_ROW:ATTN_B_ROW + 1, :]
    b_comb = b_ref[COMB_B_ROW:COMB_B_ROW + 1, :]
    b_gru = b_ref[GRU_B_ROW:GRU_B_ROW + 1, :]
    b_out = b_ref[OUT_B_ROW:OUT_B_ROW + 1, :]
    enc = enc_ref[...]
    pad = jnp.zeros((1, PW - OUTPUT - HIDDEN - MAX_LENGTH), f32)

    h = h0_ref[...].astype(f32)                                         # (1, H)

    # Static unroll over the (small, known) sequence length: h is carried as a value,
    # step t's output head overlaps step t+1's attention in the LLO schedule.
    for t in range(T):
        emb_b = emb_ref[pl.ds(t, 1), :]                                 # (1, H) bf16
        h_b = h.astype(bf16)

        # attn_weights = softmax(attn(cat(embedded, hidden))); padded lanes masked by NEG.
        cat1 = jnp.concatenate([emb_b, h_b], axis=1)                    # (1, 2H)
        la = jnp.dot(cat1, w_attn, preferred_element_type=f32) + b_attn  # (1, PW)
        ea = jnp.exp(la - jnp.max(la, axis=1, keepdims=True))
        aw = ea * pl.reciprocal(jnp.sum(ea, axis=1, keepdims=True), approx=True)

        # attn_applied = attn_weights @ encoder_outputs (padded rows are zero).
        applied = jnp.dot(aw.astype(bf16), enc, preferred_element_type=f32)  # (1, H)

        # output = relu(attn_combine(cat(embedded, attn_applied)))
        cat2 = jnp.concatenate([emb_b, applied.astype(bf16)], axis=1)   # (1, 2H)
        xc = jnp.dot(cat2, w_comb, preferred_element_type=f32) + b_comb
        x = jnp.maximum(xc[:, :H], 0.0)                                 # (1, H)

        # Single-step GRU: one matmul through the r/z-combined block weight.
        gin = jnp.concatenate([x.astype(bf16), h_b], axis=1)            # (1, 2H)
        g = jnp.dot(gin, w_gru, preferred_element_type=f32) + b_gru     # (1, PW)
        r = jax.nn.sigmoid(g[:, 0:H])
        z = jax.nn.sigmoid(g[:, H:2 * H])
        n = jnp.tanh(g[:, 2 * H:3 * H] + r * g[:, 3 * H:4 * H])
        h = (1.0 - z) * n + z * h                                       # (1, H) f32

        # log_softmax(out(gru_output)); padded lanes masked by NEG bias.
        lo = jnp.dot(h.astype(bf16), w_out, preferred_element_type=f32) + b_out
        sh = lo - jnp.max(lo, axis=1, keepdims=True)
        logp = sh - jnp.log(jnp.sum(jnp.exp(sh), axis=1, keepdims=True))  # (1, PW)

        # One lane-dense (1, 128) store per step into the resident output block.
        row = jnp.concatenate(
            [logp[:, :OUTPUT], h, aw[:, :MAX_LENGTH], pad], axis=1)
        out_ref[pl.ds(t, 1), :] = row


def pack_weights(params):
    """Pack the four weight matrices into one (SLAB_ROWS, PW) bf16 slab."""
    H = HIDDEN
    slab = jnp.zeros((SLAB_ROWS, PW), jnp.float32)

    def put(s, r, c, blk):
        return jax.lax.dynamic_update_slice(s, blk.astype(jnp.float32), (r, c))

    slab = put(slab, ATTN_W_OFF, 0, params["attn_w"])                    # (2H, L)
    slab = put(slab, COMB_W_OFF, 0, params["comb_w"])                    # (2H, H)
    wih, whh = params["gru_wih"], params["gru_whh"]                      # (H, 3H) each
    slab = put(slab, GRU_W_OFF, 0 * H, wih[:, 0:H])          # Wih_r
    slab = put(slab, GRU_W_OFF, 1 * H, wih[:, H:2 * H])      # Wih_z
    slab = put(slab, GRU_W_OFF, 2 * H, wih[:, 2 * H:3 * H])  # Wih_n
    slab = put(slab, GRU_W_OFF + H, 0 * H, whh[:, 0:H])          # Whh_r
    slab = put(slab, GRU_W_OFF + H, 1 * H, whh[:, H:2 * H])      # Whh_z
    slab = put(slab, GRU_W_OFF + H, 3 * H, whh[:, 2 * H:3 * H])  # Whh_n
    slab = put(slab, OUT_W_OFF, 0, params["out_w"])                      # (H, OUTPUT)
    return slab.astype(jnp.bfloat16)


def pack_biases(params):
    """Pack all biases (plus softmax lane masks) into one (BIAS_ROWS, PW) f32 block."""
    H = HIDDEN
    f32 = jnp.float32
    b = jnp.zeros((BIAS_ROWS, PW), f32)

    def put(s, r, c, blk):
        return jax.lax.dynamic_update_slice(s, blk.astype(f32), (r, c))

    attn_b_row = jnp.concatenate(
        [params["attn_b"].astype(f32), jnp.full((1, PW - MAX_LENGTH), NEG, f32)], axis=1)
    out_b_row = jnp.concatenate(
        [params["out_b"].astype(f32), jnp.full((1, PW - OUTPUT), NEG, f32)], axis=1)
    bih, bhh = params["gru_bih"].astype(f32), params["gru_bhh"].astype(f32)
    gru_b_row = jnp.concatenate(
        [bih[:, 0:H] + bhh[:, 0:H],          # r gate
         bih[:, H:2 * H] + bhh[:, H:2 * H],  # z gate
         bih[:, 2 * H:3 * H],                # i_n
         bhh[:, 2 * H:3 * H]], axis=1)       # h_n
    b = put(b, ATTN_B_ROW, 0, attn_b_row)
    b = put(b, COMB_B_ROW, 0, params["comb_b"])
    b = put(b, GRU_B_ROW, 0, gru_b_row)
    b = put(b, OUT_B_ROW, 0, out_b_row)
    return b


def attn_decoder_decode(params, tokens, hidden, encoder_outputs):
    """Fused T-step teacher-forced decode (one pallas_call for the whole sequence).

    tokens: (T,) int; hidden: (1,1,HIDDEN) f32; encoder_outputs: (MAX_LENGTH, HIDDEN).
    Returns (logp_seq (T, OUTPUT), final_hidden (1,1,HIDDEN), attn_seq (T, MAX_LENGTH)).
    """
    T = int(tokens.shape[0])
    w_slab = pack_weights(params)
    b_slab = pack_biases(params)
    toks = jnp.clip(tokens.astype(jnp.int32), 0, OUTPUT - 1)   # bounds-safe embedding index
    emb_seq = params["embedding"].astype(jnp.float32)[toks].astype(jnp.bfloat16)  # (T, H)
    h0 = hidden.reshape(1, HIDDEN).astype(jnp.float32)
    enc_pad = jnp.zeros((PW, HIDDEN), jnp.bfloat16).at[:MAX_LENGTH, :].set(
        encoder_outputs.astype(jnp.bfloat16))

    # TODO(synk): for batched independent sequences (v7x), stack them into the M rows of
    # every matmul and/or add a leading 'parallel' grid axis over batch.
    packed = pl.pallas_call(
        _attn_decoder_kernel,
        out_shape=jax.ShapeDtypeStruct((T, PW), jnp.float32),
    )(w_slab, b_slab, emb_seq, h0, enc_pad)

    logp_seq = packed[:, :OUTPUT]
    h_seq = packed[:, OUTPUT:OUTPUT + HIDDEN]
    attn_seq = packed[:, OUTPUT + HIDDEN:OUTPUT + HIDDEN + MAX_LENGTH]
    return logp_seq, h_seq[-1].reshape(1, 1, HIDDEN), attn_seq


def attn_decoder_forward(params, token, hidden, encoder_outputs):
    """Single-step forward matching the PyTorch module signature (T == 1)."""
    logp, h_new, attn = attn_decoder_decode(
        params, jnp.asarray(token).reshape((1,)), hidden, encoder_outputs)
    return logp, h_new, attn


def reference_step(params, token, h, encoder_outputs):
    """Pure-JAX (f32) single step of the PyTorch forward (dropout in eval mode)."""
    emb = params["embedding"][token].reshape(1, -1)
    cat1 = jnp.concatenate([emb, h], axis=1)
    aw = jax.nn.softmax(cat1 @ params["attn_w"] + params["attn_b"], axis=1)
    applied = aw @ encoder_outputs
    cat2 = jnp.concatenate([emb, applied], axis=1)
    x = jnp.maximum(cat2 @ params["comb_w"] + params["comb_b"], 0.0)
    gi = x @ params["gru_wih"] + params["gru_bih"]
    gh = h @ params["gru_whh"] + params["gru_bhh"]
    i_r, i_z, i_n = jnp.split(gi, 3, axis=1)
    h_r, h_z, h_n = jnp.split(gh, 3, axis=1)
    r = jax.nn.sigmoid(i_r + h_r)
    z = jax.nn.sigmoid(i_z + h_z)
    n = jnp.tanh(i_n + r * h_n)
    h_new = (1.0 - z) * n + z * h
    logp = jax.nn.log_softmax(h_new @ params["out_w"] + params["out_b"], axis=1)
    return logp, h_new, aw


def init_params(key):
    ks = jax.random.split(key, 11)
    s = 0.1
    f = jnp.float32
    return {
        "embedding": jax.random.normal(ks[0], (OUTPUT, OUTPUT), f) * s,
        "attn_w":    jax.random.normal(ks[1], (2 * HIDDEN, MAX_LENGTH), f) * s,
        "attn_b":    jax.random.normal(ks[2], (1, MAX_LENGTH), f) * s,
        "comb_w":    jax.random.normal(ks[3], (2 * HIDDEN, HIDDEN), f) * s,
        "comb_b":    jax.random.normal(ks[4], (1, HIDDEN), f) * s,
        "gru_wih":   jax.random.normal(ks[5], (HIDDEN, 3 * HIDDEN), f) * s,
        "gru_whh":   jax.random.normal(ks[6], (HIDDEN, 3 * HIDDEN), f) * s,
        "gru_bih":   jax.random.normal(ks[7], (1, 3 * HIDDEN), f) * s,
        "gru_bhh":   jax.random.normal(ks[8], (1, 3 * HIDDEN), f) * s,
        "out_w":     jax.random.normal(ks[9], (HIDDEN, OUTPUT), f) * s,
        "out_b":     jax.random.normal(ks[10], (1, OUTPUT), f) * s,
    }


if __name__ == "__main__":
    key = jax.random.PRNGKey(0)
    pkey, ekey, tkey = jax.random.split(key, 3)
    params = init_params(pkey)

    T = 8
    tokens = jax.random.randint(tkey, (T,), 0, OUTPUT, dtype=jnp.int32)   # teacher-forced ids
    hidden0 = jnp.zeros((1, 1, HIDDEN), jnp.float32)                       # initHidden()
    encoder_outputs = jax.random.normal(ekey, (MAX_LENGTH, HIDDEN), jnp.float32)

    decode = jax.jit(attn_decoder_decode)
    logp_seq, h_final, aw_seq = decode(params, tokens, hidden0, encoder_outputs)
    jax.block_until_ready((logp_seq, h_final, aw_seq))

    # Step-by-step pure-JAX f32 reference of the PyTorch forward, hidden threaded through.
    # Tolerance is 1e-2 because the kernel uses bf16 MXU operands (f32 accumulation) and
    # an approximate EUP reciprocal in the attention softmax; observed errors are ~1e-3.
    ATOL = RTOL = 1e-2
    h = hidden0.reshape(1, HIDDEN)
    for t in range(T):
        logp_r, h, aw_r = reference_step(params, int(tokens[t]), h, encoder_outputs)
        assert jnp.allclose(logp_seq[t:t + 1], logp_r, atol=ATOL, rtol=RTOL), f"logp mismatch @ {t}"
        assert jnp.allclose(aw_seq[t:t + 1], aw_r, atol=ATOL, rtol=RTOL), f"attn mismatch @ {t}"
    assert jnp.allclose(h_final.reshape(1, HIDDEN), h, atol=ATOL, rtol=RTOL), "hidden mismatch"

    # Single-step API (exact module forward semantics) also works.
    logp1, h1, aw1 = attn_decoder_forward(params, tokens[:1], hidden0, encoder_outputs)
    jax.block_until_ready((logp1, h1, aw1))
    logp1_r, h1_r, aw1_r = reference_step(params, int(tokens[0]), hidden0.reshape(1, HIDDEN),
                                          encoder_outputs)
    assert jnp.allclose(logp1, logp1_r, atol=ATOL, rtol=RTOL), "single-step logp mismatch"
    assert jnp.allclose(aw1, aw1_r, atol=ATOL, rtol=RTOL), "single-step attn mismatch"

    print("KERNEL_OK")
</pallas_src>

<mosaic_0001>
module attributes {stable_mosaic.version = 11 : i64} {
  func.func @_attn_decoder_kernel(%arg0: memref<224x128xbf16, #tpu.memory_space<vmem>>, %arg1: memref<8x128xf32, #tpu.memory_space<vmem>>, %arg2: memref<8x32xbf16, #tpu.memory_space<vmem>>, %arg3: memref<1x32xf32, #tpu.memory_space<vmem>>, %arg4: memref<128x32xbf16, #tpu.memory_space<vmem>>, %arg5: memref<8x128xf32, #tpu.memory_space<vmem>>) attributes {dimension_semantics = [], scalar_prefetch = 0 : i64, scratch_operands = 0 : i64, tpu.core_type = #tpu.core_type<tc>} {
    %c0 = arith.constant 0 : index
    %c0_0 = arith.constant 0 : index
    %0 = vector.load %arg0[%c0, %c0_0] : memref<224x128xbf16, #tpu.memory_space<vmem>>, vector<64x128xbf16>
    %c64 = arith.constant 64 : index
    %c0_1 = arith.constant 0 : index
    %1 = vector.load %arg0[%c64, %c0_1] : memref<224x128xbf16, #tpu.memory_space<vmem>>, vector<64x128xbf16>
    %c128 = arith.constant 128 : index
    %c0_2 = arith.constant 0 : index
    %2 = vector.load %arg0[%c128, %c0_2] : memref<224x128xbf16, #tpu.memory_space<vmem>>, vector<64x128xbf16>
    %c192 = arith.constant 192 : index
    %c0_3 = arith.constant 0 : index
    %3 = vector.load %arg0[%c192, %c0_3] : memref<224x128xbf16, #tpu.memory_space<vmem>>, vector<32x128xbf16>
    %c0_4 = arith.constant 0 : index
    %c0_5 = arith.constant 0 : index
    %4 = vector.load %arg1[%c0_4, %c0_5] : memref<8x128xf32, #tpu.memory_space<vmem>>, vector<1x128xf32>
    %c1 = arith.constant 1 : index
    %c0_6 = arith.constant 0 : index
    %5 = vector.load %arg1[%c1, %c0_6] : memref<8x128xf32, #tpu.memory_space<vmem>>, vector<1x128xf32>
    %c2 = arith.constant 2 : index
    %c0_7 = arith.constant 0 : index
    %6 = vector.load %arg1[%c2, %c0_7] : memref<8x128xf32, #tpu.memory_space<vmem>>, vector<1x128xf32>
    %c3 = arith.constant 3 : index
    %c0_8 = arith.constant 0 : index
    %7 = vector.load %arg1[%c3, %c0_8] : memref<8x128xf32, #tpu.memory_space<vmem>>, vector<1x128xf32>
    %c0_9 = arith.constant 0 : index
    %c0_10 = arith.constant 0 : index
    %8 = vector.load %arg4[%c0_9, %c0_10] : memref<128x32xbf16, #tpu.memory_space<vmem>>, vector<128x32xbf16>
    %cst = arith.constant 0.000000e+00 : f32
    %9 = vector.broadcast %cst : f32 to vector<1x56xf32>
    %c0_11 = arith.constant 0 : index
    %c0_12 = arith.constant 0 : index
    %10 = vector.load %arg3[%c0_11, %c0_12] : memref<1x32xf32, #tpu.memory_space<vmem>>, vector<1x32xf32>
    %c0_13 = arith.constant 0 : index
    %c0_14 = arith.constant 0 : index
    %11 = vector.load %arg2[%c0_13, %c0_14] : memref<8x32xbf16, #tpu.memory_space<vmem>>, vector<1x32xbf16>
    %12 = arith.truncf %10 : vector<1x32xf32> to vector<1x32xbf16>
    %13 = tpu.concatenate %11, %12 in 1 : vector<1x32xbf16>, vector<1x32xbf16> -> vector<1x64xbf16>
    %cst_15 = arith.constant dense<0.000000e+00> : vector<1x128xf32>
    %14 = tpu.matmul %13, %0, %cst_15 {dimension_numbers = #tpu.dot_dimension_numbers<[1], [0], [0], [1], [0, 0, 1, 1], [], []>} : vector<1x64xbf16>, vector<64x128xbf16>, vector<1x128xf32> -> vector<1x128xf32>
    %15 = arith.addf %14, %4 : vector<1x128xf32>
    %cst_16 = arith.constant dense<0xFF800000> : vector<1xf32>
    %16 = vector.multi_reduction <maximumf>, %15, %cst_16 [1] : vector<1x128xf32> to vector<1xf32>
    %17 = vector.shape_cast %16 : vector<1xf32> to vector<1x1xf32>
    %18 = vector.broadcast %17 : vector<1x1xf32> to vector<1x128xf32>
    %19 = arith.subf %15, %18 : vector<1x128xf32>
    %20 = math.exp %19 : vector<1x128xf32>
    %cst_17 = arith.constant dense<0.000000e+00> : vector<1xf32>
    %21 = vector.multi_reduction <add>, %20, %cst_17 [1] : vector<1x128xf32> to vector<1xf32>
    %22 = vector.shape_cast %21 : vector<1xf32> to vector<1x1xf32>
    %23 = tpu.reciprocal %22 {approx = true} : vector<1x1xf32> -> vector<1x1xf32>
    %24 = vector.broadcast %23 : vector<1x1xf32> to vector<1x128xf32>
    %25 = arith.mulf %20, %24 : vector<1x128xf32>
    %26 = arith.truncf %25 : vector<1x128xf32> to vector<1x128xbf16>
    %cst_18 = arith.constant dense<0.000000e+00> : vector<1x32xf32>
    %27 = tpu.matmul %26, %8, %cst_18 {dimension_numbers = #tpu.dot_dimension_numbers<[1], [0], [0], [1], [0, 0, 1, 1], [], []>} : vector<1x128xbf16>, vector<128x32xbf16>, vector<1x32xf32> -> vector<1x32xf32>
    %28 = arith.truncf %27 : vector<1x32xf32> to vector<1x32xbf16>
    %29 = tpu.concatenate %11, %28 in 1 : vector<1x32xbf16>, vector<1x32xbf16> -> vector<1x64xbf16>
    %cst_19 = arith.constant dense<0.000000e+00> : vector<1x128xf32>
    %30 = tpu.matmul %29, %1, %cst_19 {dimension_numbers = #tpu.dot_dimension_numbers<[1], [0], [0], [1], [0, 0, 1, 1], [], []>} : vector<1x64xbf16>, vector<64x128xbf16>, vector<1x128xf32> -> vector<1x128xf32>
    %31 = arith.addf %30, %5 : vector<1x128xf32>
    %32 = vector.extract_strided_slice %31 {offsets = [0, 0], sizes = [1, 32], strides = [1, 1]} : vector<1x128xf32> to vector<1x32xf32>
    %cst_20 = arith.constant 0.000000e+00 : f32
    %33 = vector.broadcast %cst_20 : f32 to vector<1x32xf32>
    %34 = arith.maximumf %32, %33 : vector<1x32xf32>
    %35 = arith.truncf %34 : vector<1x32xf32> to vector<1x32xbf16>
    %36 = tpu.concatenate %35, %12 in 1 : vector<1x32xbf16>, vector<1x32xbf16> -> vector<1x64xbf16>
    %cst_21 = arith.constant dense<0.000000e+00> : vector<1x128xf32>
    %37 = tpu.matmul %36, %2, %cst_21 {dimension_numbers = #tpu.dot_dimension_numbers<[1], [0], [0], [1], [0, 0, 1, 1], [], []>} : vector<1x64xbf16>, vector<64x128xbf16>, vector<1x128xf32> -> vector<1x128xf32>
    %38 = arith.addf %37, %6 : vector<1x128xf32>
    %39 = vector.extract_strided_slice %38 {offsets = [0, 0], sizes = [1, 32], strides = [1, 1]} : vector<1x128xf32> to vector<1x32xf32>
    %40 = arith.negf %39 : vector<1x32xf32>
    %41 = math.exp %40 : vector<1x32xf32>
    %cst_22 = arith.constant 1.000000e+00 : f32
    %42 = vector.broadcast %cst_22 : f32 to vector<1x32xf32>
    %43 = arith.addf %42, %41 : vector<1x32xf32>
    %44 = arith.divf %42, %43 : vector<1x32xf32>
    %45 = vector.extract_strided_slice %38 {offsets = [0, 32], sizes = [1, 32], strides = [1, 1]} : vector<1x128xf32> to vector<1x32xf32>
    %46 = arith.negf %45 : vector<1x32xf32>
    %47 = math.exp %46 : vector<1x32xf32>
    %cst_23 = arith.constant 1.000000e+00 : f32
    %48 = vector.broadcast %cst_23 : f32 to vector<1x32xf32>
    %49 = arith.addf %48, %47 : vector<1x32xf32>
    %50 = arith.divf %48, %49 : vector<1x32xf32>
    %51 = vector.extract_strided_slice %38 {offsets = [0, 64], sizes = [1, 32], strides = [1, 1]} : vector<1x128xf32> to vector<1x32xf32>
    %52 = vector.extract_strided_slice %38 {offsets = [0, 96], sizes = [1, 32], strides = [1, 1]} : vector<1x128xf32> to vector<1x32xf32>
    %53 = arith.mulf %44, %52 : vector<1x32xf32>
    %54 = arith.addf %51, %53 : vector<1x32xf32>
    %55 = math.tanh %54 : vector<1x32xf32>
    %cst_24 = arith.constant 1.000000e+00 : f32
    %56 = vector.broadcast %cst_24 : f32 to vector<1x32xf32>
    %57 = arith.subf %56, %50 : vector<1x32xf32>
    %58 = arith.mulf %57, %55 : vector<1x32xf32>
    %59 = arith.mulf %50, %10 : vector<1x32xf32>
    %60 = arith.addf %58, %59 : vector<1x32xf32>
    %61 = arith.truncf %60 : vector<1x32xf32> to vector<1x32xbf16>
    %cst_25 = arith.constant dense<0.000000e+00> : vector<1x128xf32>
    %62 = tpu.matmul %61, %3, %cst_25 {dimension_numbers = #tpu.dot_dimension_numbers<[1], [0], [0], [1], [0, 0, 1, 1], [], []>} : vector<1x32xbf16>, vector<32x128xbf16>, vector<1x128xf32> -> vector<1x128xf32>
    %63 = arith.addf %62, %7 : vector<1x128xf32>
    %cst_26 = arith.constant dense<0xFF800000> : vector<1xf32>
    %64 = vector.multi_reduction <maximumf>, %63, %cst_26 [1] : vector<1x128xf32> to vector<1xf32>
    %65 = vector.shape_cast %64 : vector<1xf32> to vector<1x1xf32>
    %66 = vector.broadcast %65 : vector<1x1xf32> to vector<1x128xf32>
    %67 = arith.subf %63, %66 : vector<1x128xf32>
    %68 = math.exp %67 : vector<1x128xf32>
    %cst_27 = arith.constant dense<0.000000e+00> : vector<1xf32>
    %69 = vector.multi_reduction <add>, %68, %cst_27 [1] : vector<1x128xf32> to vector<1xf32>
    %70 = vector.shape_cast %69 : vector<1xf32> to vector<1x1xf32>
    %71 = math.log %70 : vector<1x1xf32>
    %72 = vector.broadcast %71 : vector<1x1xf32> to vector<1x128xf32>
    %73 = arith.subf %67, %72 : vector<1x128xf32>
    %74 = vector.extract_strided_slice %73 {offsets = [0, 0], sizes = [1, 32], strides = [1, 1]} : vector<1x128xf32> to vector<1x32xf32>
    %75 = vector.extract_strided_slice %25 {offsets = [0, 0], sizes = [1, 8], strides = [1, 1]} : vector<1x128xf32> to vector<1x8xf32>
    %76 = tpu.concatenate %74, %60, %75, %9 in 1 : vector<1x32xf32>, vector<1x32xf32>, vector<1x8xf32>, vector<1x56xf32> -> vector<1x128xf32>
    %c0_28 = arith.constant 0 : index
    %c0_29 = arith.constant 0 : index
    %77 = vector.load %arg5[%c0_28, %c0_29] : memref<8x128xf32, #tpu.memory_space<vmem>>, vector<1x128xf32>
    tpu.vector_store %arg5[%c0_28, %c0_29], %76 {strides = array<i32>} : memref<8x128xf32, #tpu.memory_space<vmem>>, vector<1x128xf32>,
    %c1_30 = arith.constant 1 : index
    %c0_31 = arith.constant 0 : index
    %78 = vector.load %arg2[%c1_30, %c0_31] : memref<8x32xbf16, #tpu.memory_space<vmem>>, vector<1x32xbf16>
    %79 = arith.truncf %60 : vector<1x32xf32> to vector<1x32xbf16>
    %80 = tpu.concatenate %78, %79 in 1 : vector<1x32xbf16>, vector<1x32xbf16> -> vector<1x64xbf16>
    %cst_32 = arith.constant dense<0.000000e+00> : vector<1x128xf32>
    %81 = tpu.matmul %80, %0, %cst_32 {dimension_numbers = #tpu.dot_dimension_numbers<[1], [0], [0], [1], [0, 0, 1, 1], [], []>} : vector<1x64xbf16>, vector<64x128xbf16>, vector<1x128xf32> -> vector<1x128xf32>
    %82 = arith.addf %81, %4 : vector<1x128xf32>
    %cst_33 = arith.constant dense<0xFF800000> : vector<1xf32>
    %83 = vector.multi_reduction <maximumf>, %82, %cst_33 [1] : vector<1x128xf32> to vector<1xf32>
    %84 = vector.shape_cast %83 : vector<1xf32> to vector<1x1xf32>
    %85 = vector.broadcast %84 : vector<1x1xf32> to vector<1x128xf32>
    %86 = arith.subf %82, %85 : vector<1x128xf32>
    %87 = math.exp %86 : vector<1x128xf32>
    %cst_34 = arith.constant dense<0.000000e+00> : vector<1xf32>
    %88 = vector.multi_reduction <add>, %87, %cst_34 [1] : vector<1x128xf32> to vector<1xf32>
    %89 = vector.shape_cast %88 : vector<1xf32> to vector<1x1xf32>
    %90 = tpu.reciprocal %89 {approx = true} : vector<1x1xf32> -> vector<1x1xf32>
    %91 = vector.broadcast %90 : vector<1x1xf32> to vector<1x128xf32>
    %92 = arith.mulf %87, %91 : vector<1x128xf32>
    %93 = arith.truncf %92 : vector<1x128xf32> to vector<1x128xbf16>
    %cst_35 = arith.constant dense<0.000000e+00> : vector<1x32xf32>
    %94 = tpu.matmul %93, %8, %cst_35 {dimension_numbers = #tpu.dot_dimension_numbers<[1], [0], [0], [1], [0, 0, 1, 1], [], []>} : vector<1x128xbf16>, vector<128x32xbf16>, vector<1x32xf32> -> vector<1x32xf32>
    %95 = arith.truncf %94 : vector<1x32xf32> to vector<1x32xbf16>
    %96 = tpu.concatenate %78, %95 in 1 : vector<1x32xbf16>, vector<1x32xbf16> -> vector<1x64xbf16>
    %cst_36 = arith.constant dense<0.000000e+00> : vector<1x128xf32>
    %97 = tpu.matmul %96, %1, %cst_36 {dimension_numbers = #tpu.dot_dimension_numbers<[1], [0], [0], [1], [0, 0, 1, 1], [], []>} : vector<1x64xbf16>, vector<64x128xbf16>, vector<1x128xf32> -> vector<1x128xf32>
    %98 = arith.addf %97, %5 : vector<1x128xf32>
    %99 = vector.extract_strided_slice %98 {offsets = [0, 0], sizes = [1, 32], strides = [1, 1]} : vector<1x128xf32> to vector<1x32xf32>
    %cst_37 = arith.constant 0.000000e+00 : f32
    %100 = vector.broadcast %cst_37 : f32 to vector<1x32xf32>
    %101 = arith.maximumf %99, %100 : vector<1x32xf32>
    %102 = arith.truncf %101 : vector<1x32xf32> to vector<1x32xbf16>
    %103 = tpu.concatenate %102, %79 in 1 : vector<1x32xbf16>, vector<1x32xbf16> -> vector<1x64xbf16>
    %cst_38 = arith.constant dense<0.000000e+00> : vector<1x128xf32>
    %104 = tpu.matmul %103, %2, %cst_38 {dimension_numbers = #tpu.dot_dimension_numbers<[1], [0], [0], [1], [0, 0, 1, 1], [], []>} : vector<1x64xbf16>, vector<64x128xbf16>, vector<1x128xf32> -> vector<1x128xf32>
    %105 = arith.addf %104, %6 : vector<1x128xf32>
    %106 = vector.extract_strided_slice %105 {offsets = [0, 0], sizes = [1, 32], strides = [1, 1]} : vector<1x128xf32> to vector<1x32xf32>
    %107 = arith.negf %106 : vector<1x32xf32>
    %108 = math.exp %107 : vector<1x32xf32>
    %cst_39 = arith.constant 1.000000e+00 : f32
    %109 = vector.broadcast %cst_39 : f32 to vector<1x32xf32>
    %110 = arith.addf %109, %108 : vector<1x32xf32>
    %111 = arith.divf %109, %110 : vector<1x32xf32>
    %112 = vector.extract_strided_slice %105 {offsets = [0, 32], sizes = [1, 32], strides = [1, 1]} : vector<1x128xf32> to vector<1x32xf32>
    %113 = arith.negf %112 : vector<1x32xf32>
    %114 = math.exp %113 : vector<1x32xf32>
    %cst_40 = arith.constant 1.000000e+00 : f32
    %115 = vector.broadcast %cst_40 : f32 to vector<1x32xf32>
    %116 = arith.addf %115, %114 : vector<1x32xf32>
    %117 = arith.divf %115, %116 : vector<1x32xf32>
    %118 = vector.extract_strided_slice %105 {offsets = [0, 64], sizes = [1, 32], strides = [1, 1]} : vector<1x128xf32> to vector<1x32xf32>
    %119 = vector.extract_strided_slice %105 {offsets = [0, 96], sizes = [1, 32], strides = [1, 1]} : vector<1x128xf32> to vector<1x32xf32>
    %120 = arith.mulf %111, %119 : vector<1x32xf32>
    %121 = arith.addf %118, %120 : vector<1x32xf32>
    %122 = math.tanh %121 : vector<1x32xf32>
    %cst_41 = arith.constant 1.000000e+00 : f32
    %123 = vector.broadcast %cst_41 : f32 to vector<1x32xf32>
    %124 = arith.subf %123, %117 : vector<1x32xf32>
    %125 = arith.mulf %124, %122 : vector<1x32xf32>
    %126 = arith.mulf %117, %60 : vector<1x32xf32>
    %127 = arith.addf %125, %126 : vector<1x32xf32>
    %128 = arith.truncf %127 : vector<1x32xf32> to vector<1x32xbf16>
    %cst_42 = arith.constant dense<0.000000e+00> : vector<1x128xf32>
    %129 = tpu.matmul %128, %3, %cst_42 {dimension_numbers = #tpu.dot_dimension_numbers<[1], [0], [0], [1], [0, 0, 1, 1], [], []>} : vector<1x32xbf16>, vector<32x128xbf16>, vector<1x128xf32> -> vector<1x128xf32>
    %130 = arith.addf %129, %7 : vector<1x128xf32>
    %cst_43 = arith.constant dense<0xFF800000> : vector<1xf32>
    %131 = vector.multi_reduction <maximumf>, %130, %cst_43 [1] : vector<1x128xf32> to vector<1xf32>
    %132 = vector.shape_cast %131 : vector<1xf32> to vector<1x1xf32>
    %133 = vector.broadcast %132 : vector<1x1xf32> to vector<1x128xf32>
    %134 = arith.subf %130, %133 : vector<1x128xf32>
    %135 = math.exp %134 : vector<1x128xf32>
    %cst_44 = arith.constant dense<0.000000e+00> : vector<1xf32>
    %136 = vector.multi_reduction <add>, %135, %cst_44 [1] : vector<1x128xf32> to vector<1xf32>
    %137 = vector.shape_cast %136 : vector<1xf32> to vector<1x1xf32>
    %138 = math.log %137 : vector<1x1xf32>
    %139 = vector.broadcast %138 : vector<1x1xf32> to vector<1x128xf32>
    %140 = arith.subf %134, %139 : vector<1x128xf32>
    %141 = vector.extract_strided_slice %140 {offsets = [0, 0], sizes = [1, 32], strides = [1, 1]} : vector<1x128xf32> to vector<1x32xf32>
    %142 = vector.extract_strided_slice %92 {offsets = [0, 0], sizes = [1, 8], strides = [1, 1]} : vector<1x128xf32> to vector<1x8xf32>
    %143 = tpu.concatenate %141, %127, %142, %9 in 1 : vector<1x32xf32>, vector<1x32xf32>, vector<1x8xf32>, vector<1x56xf32> -> vector<1x128xf32>
    %c1_45 = arith.constant 1 : index
    %c0_46 = arith.constant 0 : index
    %144 = vector.load %arg5[%c1_45, %c0_46] : memref<8x128xf32, #tpu.memory_space<vmem>>, vector<1x128xf32>
    tpu.vector_store %arg5[%c1_45, %c0_46], %143 {strides = array<i32>} : memref<8x128xf32, #tpu.memory_space<vmem>>, vector<1x128xf32>,
    %c2_47 = arith.constant 2 : index
    %c0_48 = arith.constant 0 : index
    %145 = vector.load %arg2[%c2_47, %c0_48] : memref<8x32xbf16, #tpu.memory_space<vmem>>, vector<1x32xbf16>
    %146 = arith.truncf %127 : vector<1x32xf32> to vector<1x32xbf16>
    %147 = tpu.concatenate %145, %146 in 1 : vector<1x32xbf16>, vector<1x32xbf16> -> vector<1x64xbf16>
    %cst_49 = arith.constant dense<0.000000e+00> : vector<1x128xf32>
    %148 = tpu.matmul %147, %0, %cst_49 {dimension_numbers = #tpu.dot_dimension_numbers<[1], [0], [0], [1], [0, 0, 1, 1], [], []>} : vector<1x64xbf16>, vector<64x128xbf16>, vector<1x128xf32> -> vector<1x128xf32>
    %149 = arith.addf %148, %4 : vector<1x128xf32>
    %cst_50 = arith.constant dense<0xFF800000> : vector<1xf32>
    %150 = vector.multi_reduction <maximumf>, %149, %cst_50 [1] : vector<1x128xf32> to vector<1xf32>
    %151 = vector.shape_cast %150 : vector<1xf32> to vector<1x1xf32>
    %152 = vector.broadcast %151 : vector<1x1xf32> to vector<1x128xf32>
    %153 = arith.subf %149, %152 : vector<1x128xf32>
    %154 = math.exp %153 : vector<1x128xf32>
    %cst_51 = arith.constant dense<0.000000e+00> : vector<1xf32>
    %155 = vector.multi_reduction <add>, %154, %cst_51 [1] : vector<1x128xf32> to vector<1xf32>
    %156 = vector.shape_cast %155 : vector<1xf32> to vector<1x1xf32>
    %157 = tpu.reciprocal %156 {approx = true} : vector<1x1xf32> -> vector<1x1xf32>
    %158 = vector.broadcast %157 : vector<1x1xf32> to vector<1x128xf32>
    %159 = arith.mulf %154, %158 : vector<1x128xf32>
    %160 = arith.truncf %159 : vector<1x128xf32> to vector<1x128xbf16>
    %cst_52 = arith.constant dense<0.000000e+00> : vector<1x32xf32>
    %161 = tpu.matmul %160, %8, %cst_52 {dimension_numbers = #tpu.dot_dimension_numbers<[1], [0], [0], [1], [0, 0, 1, 1], [], []>} : vector<1x128xbf16>, vector<128x32xbf16>, vector<1x32xf32> -> vector<1x32xf32>
    %162 = arith.truncf %161 : vector<1x32xf32> to vector<1x32xbf16>
    %163 = tpu.concatenate %145, %162 in 1 : vector<1x32xbf16>, vector<1x32xbf16> -> vector<1x64xbf16>
    %cst_53 = arith.constant dense<0.000000e+00> : vector<1x128xf32>
    %164 = tpu.matmul %163, %1, %cst_53 {dimension_numbers = #tpu.dot_dimension_numbers<[1], [0], [0], [1], [0, 0, 1, 1], [], []>} : vector<1x64xbf16>, vector<64x128xbf16>, vector<1x128xf32> -> vector<1x128xf32>
    %165 = arith.addf %164, %5 : vector<1x128xf32>
    %166 = vector.extract_strided_slice %165 {offsets = [0, 0], sizes = [1, 32], strides = [1, 1]} : vector<1x128xf32> to vector<1x32xf32>
    %cst_54 = arith.constant 0.000000e+00 : f32
    %167 = vector.broadcast %cst_54 : f32 to vector<1x32xf32>
    %168 = arith.maximumf %166, %167 : vector<1x32xf32>
    %169 = arith.truncf %168 : vector<1x32xf32> to vector<1x32xbf16>
    %170 = tpu.concatenate %169, %146 in 1 : vector<1x32xbf16>, vector<1x32xbf16> -> vector<1x64xbf16>
    %cst_55 = arith.constant dense<0.000000e+00> : vector<1x128xf32>
    %171 = tpu.matmul %170, %2, %cst_55 {dimension_numbers = #tpu.dot_dimension_numbers<[1], [0], [0], [1], [0, 0, 1, 1], [], []>} : vector<1x64xbf16>, vector<64x128xbf16>, vector<1x128xf32> -> vector<1x128xf32>
    %172 = arith.addf %171, %6 : vector<1x128xf32>
    %173 = vector.extract_strided_slice %172 {offsets = [0, 0], sizes = [1, 32], strides = [1, 1]} : vector<1x128xf32> to vector<1x32xf32>
    %174 = arith.negf %173 : vector<1x32xf32>
    %175 = math.exp %174 : vector<1x32xf32>
    %cst_56 = arith.constant 1.000000e+00 : f32
    %176 = vector.broadcast %cst_56 : f32 to vector<1x32xf32>
    %177 = arith.addf %176, %175 : vector<1x32xf32>
    %178 = arith.divf %176, %177 : vector<1x32xf32>
    %179 = vector.extract_strided_slice %172 {offsets = [0, 32], sizes = [1, 32], strides = [1, 1]} : vector<1x128xf32> to vector<1x32xf32>
    %180 = arith.negf %179 : vector<1x32xf32>
    %181 = math.exp %180 : vector<1x32xf32>
    %cst_57 = arith.constant 1.000000e+00 : f32
    %182 = vector.broadcast %cst_57 : f32 to vector<1x32xf32>
    %183 = arith.addf %182, %181 : vector<1x32xf32>
    %184 = arith.divf %182, %183 : vector<1x32xf32>
    %185 = vector.extract_strided_slice %172 {offsets = [0, 64], sizes = [1, 32], strides = [1, 1]} : vector<1x128xf32> to vector<1x32xf32>
    %186 = vector.extract_strided_slice %172 {offsets = [0, 96], sizes = [1, 32], strides = [1, 1]} : vector<1x128xf32> to vector<1x32xf32>
    %187 = arith.mulf %178, %186 : vector<1x32xf32>
    %188 = arith.addf %185, %187 : vector<1x32xf32>
    %189 = math.tanh %188 : vector<1x32xf32>
    %cst_58 = arith.constant 1.000000e+00 : f32
    %190 = vector.broadcast %cst_58 : f32 to vector<1x32xf32>
    %191 = arith.subf %190, %184 : vector<1x32xf32>
    %192 = arith.mulf %191, %189 : vector<1x32xf32>
    %193 = arith.mulf %184, %127 : vector<1x32xf32>
    %194 = arith.addf %192, %193 : vector<1x32xf32>
    %195 = arith.truncf %194 : vector<1x32xf32> to vector<1x32xbf16>
    %cst_59 = arith.constant dense<0.000000e+00> : vector<1x128xf32>
    %196 = tpu.matmul %195, %3, %cst_59 {dimension_numbers = #tpu.dot_dimension_numbers<[1], [0], [0], [1], [0, 0, 1, 1], [], []>} : vector<1x32xbf16>, vector<32x128xbf16>, vector<1x128xf32> -> vector<1x128xf32>
    %197 = arith.addf %196, %7 : vector<1x128xf32>
    %cst_60 = arith.constant dense<0xFF800000> : vector<1xf32>
    %198 = vector.multi_reduction <maximumf>, %197, %cst_60 [1] : vector<1x128xf32> to vector<1xf32>
    %199 = vector.shape_cast %198 : vector<1xf32> to vector<1x1xf32>
    %200 = vector.broadcast %199 : vector<1x1xf32> to vector<1x128xf32>
    %201 = arith.subf %197, %200 : vector<1x128xf32>
    %202 = math.exp %201 : vector<1x128xf32>
    %cst_61 = arith.constant dense<0.000000e+00> : vector<1xf32>
    %203 = vector.multi_reduction <add>, %202, %cst_61 [1] : vector<1x128xf32> to vector<1xf32>
    %204 = vector.shape_cast %203 : vector<1xf32> to vector<1x1xf32>
    %205 = math.log %204 : vector<1x1xf32>
    %206 = vector.broadcast %205 : vector<1x1xf32> to vector<1x128xf32>
    %207 = arith.subf %201, %206 : vector<1x128xf32>
    %208 = vector.extract_strided_slice %207 {offsets = [0, 0], sizes = [1, 32], strides = [1, 1]} : vector<1x128xf32> to vector<1x32xf32>
    %209 = vector.extract_strided_slice %159 {offsets = [0, 0], sizes = [1, 8], strides = [1, 1]} : vector<1x128xf32> to vector<1x8xf32>
    %210 = tpu.concatenate %208, %194, %209, %9 in 1 : vector<1x32xf32>, vector<1x32xf32>, vector<1x8xf32>, vector<1x56xf32> -> vector<1x128xf32>
    %c2_62 = arith.constant 2 : index
    %c0_63 = arith.constant 0 : index
    %211 = vector.load %arg5[%c2_62, %c0_63] : memref<8x128xf32, #tpu.memory_space<vmem>>, vector<1x128xf32>
    tpu.vector_store %arg5[%c2_62, %c0_63], %210 {strides = array<i32>} : memref<8x128xf32, #tpu.memory_space<vmem>>, vector<1x128xf32>,
    %c3_64 = arith.constant 3 : index
    %c0_65 = arith.constant 0 : index
    %212 = vector.load %arg2[%c3_64, %c0_65] : memref<8x32xbf16, #tpu.memory_space<vmem>>, vector<1x32xbf16>
    %213 = arith.truncf %194 : vector<1x32xf32> to vector<1x32xbf16>
    %214 = tpu.concatenate %212, %213 in 1 : vector<1x32xbf16>, vector<1x32xbf16> -> vector<1x64xbf16>
    %cst_66 = arith.constant dense<0.000000e+00> : vector<1x128xf32>
    %215 = tpu.matmul %214, %0, %cst_66 {dimension_numbers = #tpu.dot_dimension_numbers<[1], [0], [0], [1], [0, 0, 1, 1], [], []>} : vector<1x64xbf16>, vector<64x128xbf16>, vector<1x128xf32> -> vector<1x128xf32>
    %216 = arith.addf %215, %4 : vector<1x128xf32>
    %cst_67 = arith.constant dense<0xFF800000> : vector<1xf32>
    %217 = vector.multi_reduction <maximumf>, %216, %cst_67 [1] : vector<1x128xf32> to vector<1xf32>
    %218 = vector.shape_cast %217 : vector<1xf32> to vector<1x1xf32>
    %219 = vector.broadcast %218 : vector<1x1xf32> to vector<1x128xf32>
    %220 = arith.subf %216, %219 : vector<1x128xf32>
    %221 = math.exp %220 : vector<1x128xf32>
    %cst_68 = arith.constant dense<0.000000e+00> : vector<1xf32>
    %222 = vector.multi_reduction <add>, %221, %cst_68 [1] : vector<1x128xf32> to vector<1xf32>
    %223 = vector.shape_cast %222 : vector<1xf32> to vector<1x1xf32>
    %224 = tpu.reciprocal %223 {approx = true} : vector<1x1xf32> -> vector<1x1xf32>
    %225 = vector.broadcast %224 : vector<1x1xf32> to vector<1x128xf32>
    %226 = arith.mulf %221, %225 : vector<1x128xf32>
    %227 = arith.truncf %226 : vector<1x128xf32> to vector<1x128xbf16>
    %cst_69 = arith.constant dense<0.000000e+00> : vector<1x32xf32>
    %228 = tpu.matmul %227, %8, %cst_69 {dimension_numbers = #tpu.dot_dimension_numbers<[1], [0], [0], [1], [0, 0, 1, 1], [], []>} : vector<1x128xbf16>, vector<128x32xbf16>, vector<1x32xf32> -> vector<1x32xf32>
    %229 = arith.truncf %228 : vector<1x32xf32> to vector<1x32xbf16>
    %230 = tpu.concatenate %212, %229 in 1 : vector<1x32xbf16>, vector<1x32xbf16> -> vector<1x64xbf16>
    %cst_70 = arith.constant dense<0.000000e+00> : vector<1x128xf32>
    %231 = tpu.matmul %230, %1, %cst_70 {dimension_numbers = #tpu.dot_dimension_numbers<[1], [0], [0], [1], [0, 0, 1, 1], [], []>} : vector<1x64xbf16>, vector<64x128xbf16>, vector<1x128xf32> -> vector<1x128xf32>
    %232 = arith.addf %231, %5 : vector<1x128xf32>
    %233 = vector.extract_strided_slice %232 {offsets = [0, 0], sizes = [1, 32], strides = [1, 1]} : vector<1x128xf32> to vector<1x32xf32>
    %cst_71 = arith.constant 0.000000e+00 : f32
    %234 = vector.broadcast %cst_71 : f32 to vector<1x32xf32>
    %235 = arith.maximumf %233, %234 : vector<1x32xf32>
    %236 = arith.truncf %235 : vector<1x32xf32> to vector<1x32xbf16>
    %237 = tpu.concatenate %236, %213 in 1 : vector<1x32xbf16>, vector<1x32xbf16> -> vector<1x64xbf16>
    %cst_72 = arith.constant dense<0.000000e+00> : vector<1x128xf32>
    %238 = tpu.matmul %237, %2, %cst_72 {dimension_numbers = #tpu.dot_dimension_numbers<[1], [0], [0], [1], [0, 0, 1, 1], [], []>} : vector<1x64xbf16>, vector<64x128xbf16>, vector<1x128xf32> -> vector<1x128xf32>
    %239 = arith.addf %238, %6 : vector<1x128xf32>
    %240 = vector.extract_strided_slice %239 {offsets = [0, 0], sizes = [1, 32], strides = [1, 1]} : vector<1x128xf32> to vector<1x32xf32>
    %241 = arith.negf %240 : vector<1x32xf32>
    %242 = math.exp %241 : vector<1x32xf32>
    %cst_73 = arith.constant 1.000000e+00 : f32
    %243 = vector.broadcast %cst_73 : f32 to vector<1x32xf32>
    %244 = arith.addf %243, %242 : vector<1x32xf32>
    %245 = arith.divf %243, %244 : vector<1x32xf32>
    %246 = vector.extract_strided_slice %239 {offsets = [0, 32], sizes = [1, 32], strides = [1, 1]} : vector<1x128xf32> to vector<1x32xf32>
    %247 = arith.negf %246 : vector<1x32xf32>
    %248 = math.exp %247 : vector<1x32xf32>
    %cst_74 = arith.constant 1.000000e+00 : f32
    %249 = vector.broadcast %cst_74 : f32 to vector<1x32xf32>
    %250 = arith.addf %249, %248 : vector<1x32xf32>
    %251 = arith.divf %249, %250 : vector<1x32xf32>
    %252 = vector.extract_strided_slice %239 {offsets = [0, 64], sizes = [1, 32], strides = [1, 1]} : vector<1x128xf32> to vector<1x32xf32>
    %253 = vector.extract_strided_slice %239 {offsets = [0, 96], sizes = [1, 32], strides = [1, 1]} : vector<1x128xf32> to vector<1x32xf32>
    %254 = arith.mulf %245, %253 : vector<1x32xf32>
    %255 = arith.addf %252, %254 : vector<1x32xf32>
    %256 = math.tanh %255 : vector<1x32xf32>
    %cst_75 = arith.constant 1.000000e+00 : f32
    %257 = vector.broadcast %cst_75 : f32 to vector<1x32xf32>
    %258 = arith.subf %257, %251 : vector<1x32xf32>
    %259 = arith.mulf %258, %256 : vector<1x32xf32>
    %260 = arith.mulf %251, %194 : vector<1x32xf32>
    %261 = arith.addf %259, %260 : vector<1x32xf32>
    %262 = arith.truncf %261 : vector<1x32xf32> to vector<1x32xbf16>
    %cst_76 = arith.constant dense<0.000000e+00> : vector<1x128xf32>
    %263 = tpu.matmul %262, %3, %cst_76 {dimension_numbers = #tpu.dot_dimension_numbers<[1], [0], [0], [1], [0, 0, 1, 1], [], []>} : vector<1x32xbf16>, vector<32x128xbf16>, vector<1x128xf32> -> vector<1x128xf32>
    %264 = arith.addf %263, %7 : vector<1x128xf32>
    %cst_77 = arith.constant dense<0xFF800000> : vector<1xf32>
    %265 = vector.multi_reduction <maximumf>, %264, %cst_77 [1] : vector<1x128xf32> to vector<1xf32>
    %266 = vector.shape_cast %265 : vector<1xf32> to vector<1x1xf32>
    %267 = vector.broadcast %266 : vector<1x1xf32> to vector<1x128xf32>
    %268 = arith.subf %264, %267 : vector<1x128xf32>
    %269 = math.exp %268 : vector<1x128xf32>
    %cst_78 = arith.constant dense<0.000000e+00> : vector<1xf32>
    %270 = vector.multi_reduction <add>, %269, %cst_78 [1] : vector<1x128xf32> to vector<1xf32>
    %271 = vector.shape_cast %270 : vector<1xf32> to vector<1x1xf32>
    %272 = math.log %271 : vector<1x1xf32>
    %273 = vector.broadcast %272 : vector<1x1xf32> to vector<1x128xf32>
    %274 = arith.subf %268, %273 : vector<1x128xf32>
    %275 = vector.extract_strided_slice %274 {offsets = [0, 0], sizes = [1, 32], strides = [1, 1]} : vector<1x128xf32> to vector<1x32xf32>
    %276 = vector.extract_strided_slice %226 {offsets = [0, 0], sizes = [1, 8], strides = [1, 1]} : vector<1x128xf32> to vector<1x8xf32>
    %277 = tpu.concatenate %275, %261, %276, %9 in 1 : vector<1x32xf32>, vector<1x32xf32>, vector<1x8xf32>, vector<1x56xf32> -> vector<1x128xf32>
    %c3_79 = arith.constant 3 : index
    %c0_80 = arith.constant 0 : index
    %278 = vector.load %arg5[%c3_79, %c0_80] : memref<8x128xf32, #tpu.memory_space<vmem>>, vector<1x128xf32>
    tpu.vector_store %arg5[%c3_79, %c0_80], %277 {strides = array<i32>} : memref<8x128xf32, #tpu.memory_space<vmem>>, vector<1x128xf32>,
    %c4 = arith.constant 4 : index
    %c0_81 = arith.constant 0 : index
    %279 = vector.load %arg2[%c4, %c0_81] : memref<8x32xbf16, #tpu.memory_space<vmem>>, vector<1x32xbf16>
    %280 = arith.truncf %261 : vector<1x32xf32> to vector<1x32xbf16>
    %281 = tpu.concatenate %279, %280 in 1 : vector<1x32xbf16>, vector<1x32xbf16> -> vector<1x64xbf16>
    %cst_82 = arith.constant dense<0.000000e+00> : vector<1x128xf32>
    %282 = tpu.matmul %281, %0, %cst_82 {dimension_numbers = #tpu.dot_dimension_numbers<[1], [0], [0], [1], [0, 0, 1, 1], [], []>} : vector<1x64xbf16>, vector<64x128xbf16>, vector<1x128xf32> -> vector<1x128xf32>
    %283 = arith.addf %282, %4 : vector<1x128xf32>
    %cst_83 = arith.constant dense<0xFF800000> : vector<1xf32>
    %284 = vector.multi_reduction <maximumf>, %283, %cst_83 [1] : vector<1x128xf32> to vector<1xf32>
    %285 = vector.shape_cast %284 : vector<1xf32> to vector<1x1xf32>
    %286 = vector.broadcast %285 : vector<1x1xf32> to vector<1x128xf32>
    %287 = arith.subf %283, %286 : vector<1x128xf32>
    %288 = math.exp %287 : vector<1x128xf32>
    %cst_84 = arith.constant dense<0.000000e+00> : vector<1xf32>
    %289 = vector.multi_reduction <add>, %288, %cst_84 [1] : vector<1x128xf32> to vector<1xf32>
    %290 = vector.shape_cast %289 : vector<1xf32> to vector<1x1xf32>
    %291 = tpu.reciprocal %290 {approx = true} : vector<1x1xf32> -> vector<1x1xf32>
    %292 = vector.broadcast %291 : vector<1x1xf32> to vector<1x128xf32>
    %293 = arith.mulf %288, %292 : vector<1x128xf32>
    %294 = arith.truncf %293 : vector<1x128xf32> to vector<1x128xbf16>
    %cst_85 = arith.constant dense<0.000000e+00> : vector<1x32xf32>
    %295 = tpu.matmul %294, %8, %cst_85 {dimension_numbers = #tpu.dot_dimension_numbers<[1], [0], [0], [1], [0, 0, 1, 1], [], []>} : vector<1x128xbf16>, vector<128x32xbf16>, vector<1x32xf32> -> vector<1x32xf32>
    %296 = arith.truncf %295 : vector<1x32xf32> to vector<1x32xbf16>
    %297 = tpu.concatenate %279, %296 in 1 : vector<1x32xbf16>, vector<1x32xbf16> -> vector<1x64xbf16>
    %cst_86 = arith.constant dense<0.000000e+00> : vector<1x128xf32>
    %298 = tpu.matmul %297, %1, %cst_86 {dimension_numbers = #tpu.dot_dimension_numbers<[1], [0], [0], [1], [0, 0, 1, 1], [], []>} : vector<1x64xbf16>, vector<64x128xbf16>, vector<1x128xf32> -> vector<1x128xf32>
    %299 = arith.addf %298, %5 : vector<1x128xf32>
    %300 = vector.extract_strided_slice %299 {offsets = [0, 0], sizes = [1, 32], strides = [1, 1]} : vector<1x128xf32> to vector<1x32xf32>
    %cst_87 = arith.constant 0.000000e+00 : f32
    %301 = vector.broadcast %cst_87 : f32 to vector<1x32xf32>
    %302 = arith.maximumf %300, %301 : vector<1x32xf32>
    %303 = arith.truncf %302 : vector<1x32xf32> to vector<1x32xbf16>
    %304 = tpu.concatenate %303, %280 in 1 : vector<1x32xbf16>, vector<1x32xbf16> -> vector<1x64xbf16>
    %cst_88 = arith.constant dense<0.000000e+00> : vector<1x128xf32>
    %305 = tpu.matmul %304, %2, %cst_88 {dimension_numbers = #tpu.dot_dimension_numbers<[1], [0], [0], [1], [0, 0, 1, 1], [], []>} : vector<1x64xbf16>, vector<64x128xbf16>, vector<1x128xf32> -> vector<1x128xf32>
    %306 = arith.addf %305, %6 : vector<1x128xf32>
    %307 = vector.extract_strided_slice %306 {offsets = [0, 0], sizes = [1, 32], strides = [1, 1]} : vector<1x128xf32> to vector<1x32xf32>
    %308 = arith.negf %307 : vector<1x32xf32>
    %309 = math.exp %308 : vector<1x32xf32>
    %cst_89 = arith.constant 1.000000e+00 : f32
    %310 = vector.broadcast %cst_89 : f32 to vector<1x32xf32>
    %311 = arith.addf %310, %309 : vector<1x32xf32>
    %312 = arith.divf %310, %311 : vector<1x32xf32>
    %313 = vector.extract_strided_slice %306 {offsets = [0, 32], sizes = [1, 32], strides = [1, 1]} : vector<1x128xf32> to vector<1x32xf32>
    %314 = arith.negf %313 : vector<1x32xf32>
    %315 = math.exp %314 : vector<1x32xf32>
    %cst_90 = arith.constant 1.000000e+00 : f32
    %316 = vector.broadcast %cst_90 : f32 to vector<1x32xf32>
    %317 = arith.addf %316, %315 : vector<1x32xf32>
    %318 = arith.divf %316, %317 : vector<1x32xf32>
    %319 = vector.extract_strided_slice %306 {offsets = [0, 64], sizes = [1, 32], strides = [1, 1]} : vector<1x128xf32> to vector<1x32xf32>
    %320 = vector.extract_strided_slice %306 {offsets = [0, 96], sizes = [1, 32], strides = [1, 1]} : vector<1x128xf32> to vector<1x32xf32>
    %321 = arith.mulf %312, %320 : vector<1x32xf32>
    %322 = arith.addf %319, %321 : vector<1x32xf32>
    %323 = math.tanh %322 : vector<1x32xf32>
    %cst_91 = arith.constant 1.000000e+00 : f32
    %324 = vector.broadcast %cst_91 : f32 to vector<1x32xf32>
    %325 = arith.subf %324, %318 : vector<1x32xf32>
    %326 = arith.mulf %325, %323 : vector<1x32xf32>
    %327 = arith.mulf %318, %261 : vector<1x32xf32>
    %328 = arith.addf %326, %327 : vector<1x32xf32>
    %329 = arith.truncf %328 : vector<1x32xf32> to vector<1x32xbf16>
    %cst_92 = arith.constant dense<0.000000e+00> : vector<1x128xf32>
    %330 = tpu.matmul %329, %3, %cst_92 {dimension_numbers = #tpu.dot_dimension_numbers<[1], [0], [0], [1], [0, 0, 1, 1], [], []>} : vector<1x32xbf16>, vector<32x128xbf16>, vector<1x128xf32> -> vector<1x128xf32>
    %331 = arith.addf %330, %7 : vector<1x128xf32>
    %cst_93 = arith.constant dense<0xFF800000> : vector<1xf32>
    %332 = vector.multi_reduction <maximumf>, %331, %cst_93 [1] : vector<1x128xf32> to vector<1xf32>
    %333 = vector.shape_cast %332 : vector<1xf32> to vector<1x1xf32>
    %334 = vector.broadcast %333 : vector<1x1xf32> to vector<1x128xf32>
    %335 = arith.subf %331, %334 : vector<1x128xf32>
    %336 = math.exp %335 : vector<1x128xf32>
    %cst_94 = arith.constant dense<0.000000e+00> : vector<1xf32>
    %337 = vector.multi_reduction <add>, %336, %cst_94 [1] : vector<1x128xf32> to vector<1xf32>
    %338 = vector.shape_cast %337 : vector<1xf32> to vector<1x1xf32>
    %339 = math.log %338 : vector<1x1xf32>
    %340 = vector.broadcast %339 : vector<1x1xf32> to vector<1x128xf32>
    %341 = arith.subf %335, %340 : vector<1x128xf32>
    %342 = vector.extract_strided_slice %341 {offsets = [0, 0], sizes = [1, 32], strides = [1, 1]} : vector<1x128xf32> to vector<1x32xf32>
    %343 = vector.extract_strided_slice %293 {offsets = [0, 0], sizes = [1, 8], strides = [1, 1]} : vector<1x128xf32> to vector<1x8xf32>
    %344 = tpu.concatenate %342, %328, %343, %9 in 1 : vector<1x32xf32>, vector<1x32xf32>, vector<1x8xf32>, vector<1x56xf32> -> vector<1x128xf32>
    %c4_95 = arith.constant 4 : index
    %c0_96 = arith.constant 0 : index
    %345 = vector.load %arg5[%c4_95, %c0_96] : memref<8x128xf32, #tpu.memory_space<vmem>>, vector<1x128xf32>
    tpu.vector_store %arg5[%c4_95, %c0_96], %344 {strides = array<i32>} : memref<8x128xf32, #tpu.memory_space<vmem>>, vector<1x128xf32>,
    %c5 = arith.constant 5 : index
    %c0_97 = arith.constant 0 : index
    %346 = vector.load %arg2[%c5, %c0_97] : memref<8x32xbf16, #tpu.memory_space<vmem>>, vector<1x32xbf16>
    %347 = arith.truncf %328 : vector<1x32xf32> to vector<1x32xbf16>
    %348 = tpu.concatenate %346, %347 in 1 : vector<1x32xbf16>, vector<1x32xbf16> -> vector<1x64xbf16>
    %cst_98 = arith.constant dense<0.000000e+00> : vector<1x128xf32>
    %349 = tpu.matmul %348, %0, %cst_98 {dimension_numbers = #tpu.dot_dimension_numbers<[1], [0], [0], [1], [0, 0, 1, 1], [], []>} : vector<1x64xbf16>, vector<64x128xbf16>, vector<1x128xf32> -> vector<1x128xf32>
    %350 = arith.addf %349, %4 : vector<1x128xf32>
    %cst_99 = arith.constant dense<0xFF800000> : vector<1xf32>
    %351 = vector.multi_reduction <maximumf>, %350, %cst_99 [1] : vector<1x128xf32> to vector<1xf32>
    %352 = vector.shape_cast %351 : vector<1xf32> to vector<1x1xf32>
    %353 = vector.broadcast %352 : vector<1x1xf32> to vector<1x128xf32>
    %354 = arith.subf %350, %353 : vector<1x128xf32>
    %355 = math.exp %354 : vector<1x128xf32>
    %cst_100 = arith.constant dense<0.000000e+00> : vector<1xf32>
    %356 = vector.multi_reduction <add>, %355, %cst_100 [1] : vector<1x128xf32> to vector<1xf32>
    %357 = vector.shape_cast %356 : vector<1xf32> to vector<1x1xf32>
    %358 = tpu.reciprocal %357 {approx = true} : vector<1x1xf32> -> vector<1x1xf32>
    %359 = vector.broadcast %358 : vector<1x1xf32> to vector<1x128xf32>
    %360 = arith.mulf %355, %359 : vector<1x128xf32>
    %361 = arith.truncf %360 : vector<1x128xf32> to vector<1x128xbf16>
    %cst_101 = arith.constant dense<0.000000e+00> : vector<1x32xf32>
    %362 = tpu.matmul %361, %8, %cst_101 {dimension_numbers = #tpu.dot_dimension_numbers<[1], [0], [0], [1], [0, 0, 1, 1], [], []>} : vector<1x128xbf16>, vector<128x32xbf16>, vector<1x32xf32> -> vector<1x32xf32>
    %363 = arith.truncf %362 : vector<1x32xf32> to vector<1x32xbf16>
    %364 = tpu.concatenate %346, %363 in 1 : vector<1x32xbf16>, vector<1x32xbf16> -> vector<1x64xbf16>
    %cst_102 = arith.constant dense<0.000000e+00> : vector<1x128xf32>
    %365 = tpu.matmul %364, %1, %cst_102 {dimension_numbers = #tpu.dot_dimension_numbers<[1], [0], [0], [1], [0, 0, 1, 1], [], []>} : vector<1x64xbf16>, vector<64x128xbf16>, vector<1x128xf32> -> vector<1x128xf32>
    %366 = arith.addf %365, %5 : vector<1x128xf32>
    %367 = vector.extract_strided_slice %366 {offsets = [0, 0], sizes = [1, 32], strides = [1, 1]} : vector<1x128xf32> to vector<1x32xf32>
    %cst_103 = arith.constant 0.000000e+00 : f32
    %368 = vector.broadcast %cst_103 : f32 to vector<1x32xf32>
    %369 = arith.maximumf %367, %368 : vector<1x32xf32>
    %370 = arith.truncf %369 : vector<1x32xf32> to vector<1x32xbf16>
    %371 = tpu.concatenate %370, %347 in 1 : vector<1x32xbf16>, vector<1x32xbf16> -> vector<1x64xbf16>
    %cst_104 = arith.constant dense<0.000000e+00> : vector<1x128xf32>
    %372 = tpu.matmul %371, %2, %cst_104 {dimension_numbers = #tpu.dot_dimension_numbers<[1], [0], [0], [1], [0, 0, 1, 1], [], []>} : vector<1x64xbf16>, vector<64x128xbf16>, vector<1x128xf32> -> vector<1x128xf32>
    %373 = arith.addf %372, %6 : vector<1x128xf32>
    %374 = vector.extract_strided_slice %373 {offsets = [0, 0], sizes = [1, 32], strides = [1, 1]} : vector<1x128xf32> to vector<1x32xf32>
    %375 = arith.negf %374 : vector<1x32xf32>
    %376 = math.exp %375 : vector<1x32xf32>
    %cst_105 = arith.constant 1.000000e+00 : f32
    %377 = vector.broadcast %cst_105 : f32 to vector<1x32xf32>
    %378 = arith.addf %377, %376 : vector<1x32xf32>
    %379 = arith.divf %377, %378 : vector<1x32xf32>
    %380 = vector.extract_strided_slice %373 {offsets = [0, 32], sizes = [1, 32], strides = [1, 1]} : vector<1x128xf32> to vector<1x32xf32>
    %381 = arith.negf %380 : vector<1x32xf32>
    %382 = math.exp %381 : vector<1x32xf32>
    %cst_106 = arith.constant 1.000000e+00 : f32
    %383 = vector.broadcast %cst_106 : f32 to vector<1x32xf32>
    %384 = arith.addf %383, %382 : vector<1x32xf32>
    %385 = arith.divf %383, %384 : vector<1x32xf32>
    %386 = vector.extract_strided_slice %373 {offsets = [0, 64], sizes = [1, 32], strides = [1, 1]} : vector<1x128xf32> to vector<1x32xf32>
    %387 = vector.extract_strided_slice %373 {offsets = [0, 96], sizes = [1, 32], strides = [1, 1]} : vector<1x128xf32> to vector<1x32xf32>
    %388 = arith.mulf %379, %387 : vector<1x32xf32>
    %389 = arith.addf %386, %388 : vector<1x32xf32>
    %390 = math.tanh %389 : vector<1x32xf32>
    %cst_107 = arith.constant 1.000000e+00 : f32
    %391 = vector.broadcast %cst_107 : f32 to vector<1x32xf32>
    %392 = arith.subf %391, %385 : vector<1x32xf32>
    %393 = arith.mulf %392, %390 : vector<1x32xf32>
    %394 = arith.mulf %385, %328 : vector<1x32xf32>
    %395 = arith.addf %393, %394 : vector<1x32xf32>
    %396 = arith.truncf %395 : vector<1x32xf32> to vector<1x32xbf16>
    %cst_108 = arith.constant dense<0.000000e+00> : vector<1x128xf32>
    %397 = tpu.matmul %396, %3, %cst_108 {dimension_numbers = #tpu.dot_dimension_numbers<[1], [0], [0], [1], [0, 0, 1, 1], [], []>} : vector<1x32xbf16>, vector<32x128xbf16>, vector<1x128xf32> -> vector<1x128xf32>
    %398 = arith.addf %397, %7 : vector<1x128xf32>
    %cst_109 = arith.constant dense<0xFF800000> : vector<1xf32>
    %399 = vector.multi_reduction <maximumf>, %398, %cst_109 [1] : vector<1x128xf32> to vector<1xf32>
    %400 = vector.shape_cast %399 : vector<1xf32> to vector<1x1xf32>
    %401 = vector.broadcast %400 : vector<1x1xf32> to vector<1x128xf32>
    %402 = arith.subf %398, %401 : vector<1x128xf32>
    %403 = math.exp %402 : vector<1x128xf32>
    %cst_110 = arith.constant dense<0.000000e+00> : vector<1xf32>
    %404 = vector.multi_reduction <add>, %403, %cst_110 [1] : vector<1x128xf32> to vector<1xf32>
    %405 = vector.shape_cast %404 : vector<1xf32> to vector<1x1xf32>
    %406 = math.log %405 : vector<1x1xf32>
    %407 = vector.broadcast %406 : vector<1x1xf32> to vector<1x128xf32>
    %408 = arith.subf %402, %407 : vector<1x128xf32>
    %409 = vector.extract_strided_slice %408 {offsets = [0, 0], sizes = [1, 32], strides = [1, 1]} : vector<1x128xf32> to vector<1x32xf32>
    %410 = vector.extract_strided_slice %360 {offsets = [0, 0], sizes = [1, 8], strides = [1, 1]} : vector<1x128xf32> to vector<1x8xf32>
    %411 = tpu.concatenate %409, %395, %410, %9 in 1 : vector<1x32xf32>, vector<1x32xf32>, vector<1x8xf32>, vector<1x56xf32> -> vector<1x128xf32>
    %c5_111 = arith.constant 5 : index
    %c0_112 = arith.constant 0 : index
    %412 = vector.load %arg5[%c5_111, %c0_112] : memref<8x128xf32, #tpu.memory_space<vmem>>, vector<1x128xf32>
    tpu.vector_store %arg5[%c5_111, %c0_112], %411 {strides = array<i32>} : memref<8x128xf32, #tpu.memory_space<vmem>>, vector<1x128xf32>,
    %c6 = arith.constant 6 : index
    %c0_113 = arith.constant 0 : index
    %413 = vector.load %arg2[%c6, %c0_113] : memref<8x32xbf16, #tpu.memory_space<vmem>>, vector<1x32xbf16>
    %414 = arith.truncf %395 : vector<1x32xf32> to vector<1x32xbf16>
    %415 = tpu.concatenate %413, %414 in 1 : vector<1x32xbf16>, vector<1x32xbf16> -> vector<1x64xbf16>
    %cst_114 = arith.constant dense<0.000000e+00> : vector<1x128xf32>
    %416 = tpu.matmul %415, %0, %cst_114 {dimension_numbers = #tpu.dot_dimension_numbers<[1], [0], [0], [1], [0, 0, 1, 1], [], []>} : vector<1x64xbf16>, vector<64x128xbf16>, vector<1x128xf32> -> vector<1x128xf32>
    %417 = arith.addf %416, %4 : vector<1x128xf32>
    %cst_115 = arith.constant dense<0xFF800000> : vector<1xf32>
    %418 = vector.multi_reduction <maximumf>, %417, %cst_115 [1] : vector<1x128xf32> to vector<1xf32>
    %419 = vector.shape_cast %418 : vector<1xf32> to vector<1x1xf32>
    %420 = vector.broadcast %419 : vector<1x1xf32> to vector<1x128xf32>
    %421 = arith.subf %417, %420 : vector<1x128xf32>
    %422 = math.exp %421 : vector<1x128xf32>
    %cst_116 = arith.constant dense<0.000000e+00> : vector<1xf32>
    %423 = vector.multi_reduction <add>, %422, %cst_116 [1] : vector<1x128xf32> to vector<1xf32>
    %424 = vector.shape_cast %423 : vector<1xf32> to vector<1x1xf32>
    %425 = tpu.reciprocal %424 {approx = true} : vector<1x1xf32> -> vector<1x1xf32>
    %426 = vector.broadcast %425 : vector<1x1xf32> to vector<1x128xf32>
    %427 = arith.mulf %422, %426 : vector<1x128xf32>
    %428 = arith.truncf %427 : vector<1x128xf32> to vector<1x128xbf16>
    %cst_117 = arith.constant dense<0.000000e+00> : vector<1x32xf32>
    %429 = tpu.matmul %428, %8, %cst_117 {dimension_numbers = #tpu.dot_dimension_numbers<[1], [0], [0], [1], [0, 0, 1, 1], [], []>} : vector<1x128xbf16>, vector<128x32xbf16>, vector<1x32xf32> -> vector<1x32xf32>
    %430 = arith.truncf %429 : vector<1x32xf32> to vector<1x32xbf16>
    %431 = tpu.concatenate %413, %430 in 1 : vector<1x32xbf16>, vector<1x32xbf16> -> vector<1x64xbf16>
    %cst_118 = arith.constant dense<0.000000e+00> : vector<1x128xf32>
    %432 = tpu.matmul %431, %1, %cst_118 {dimension_numbers = #tpu.dot_dimension_numbers<[1], [0], [0], [1], [0, 0, 1, 1], [], []>} : vector<1x64xbf16>, vector<64x128xbf16>, vector<1x128xf32> -> vector<1x128xf32>
    %433 = arith.addf %432, %5 : vector<1x128xf32>
    %434 = vector.extract_strided_slice %433 {offsets = [0, 0], sizes = [1, 32], strides = [1, 1]} : vector<1x128xf32> to vector<1x32xf32>
    %cst_119 = arith.constant 0.000000e+00 : f32
    %435 = vector.broadcast %cst_119 : f32 to vector<1x32xf32>
    %436 = arith.maximumf %434, %435 : vector<1x32xf32>
    %437 = arith.truncf %436 : vector<1x32xf32> to vector<1x32xbf16>
    %438 = tpu.concatenate %437, %414 in 1 : vector<1x32xbf16>, vector<1x32xbf16> -> vector<1x64xbf16>
    %cst_120 = arith.constant dense<0.000000e+00> : vector<1x128xf32>
    %439 = tpu.matmul %438, %2, %cst_120 {dimension_numbers = #tpu.dot_dimension_numbers<[1], [0], [0], [1], [0, 0, 1, 1], [], []>} : vector<1x64xbf16>, vector<64x128xbf16>, vector<1x128xf32> -> vector<1x128xf32>
    %440 = arith.addf %439, %6 : vector<1x128xf32>
    %441 = vector.extract_strided_slice %440 {offsets = [0, 0], sizes = [1, 32], strides = [1, 1]} : vector<1x128xf32> to vector<1x32xf32>
    %442 = arith.negf %441 : vector<1x32xf32>
    %443 = math.exp %442 : vector<1x32xf32>
    %cst_121 = arith.constant 1.000000e+00 : f32
    %444 = vector.broadcast %cst_121 : f32 to vector<1x32xf32>
    %445 = arith.addf %444, %443 : vector<1x32xf32>
    %446 = arith.divf %444, %445 : vector<1x32xf32>
    %447 = vector.extract_strided_slice %440 {offsets = [0, 32], sizes = [1, 32], strides = [1, 1]} : vector<1x128xf32> to vector<1x32xf32>
    %448 = arith.negf %447 : vector<1x32xf32>
    %449 = math.exp %448 : vector<1x32xf32>
    %cst_122 = arith.constant 1.000000e+00 : f32
    %450 = vector.broadcast %cst_122 : f32 to vector<1x32xf32>
    %451 = arith.addf %450, %449 : vector<1x32xf32>
    %452 = arith.divf %450, %451 : vector<1x32xf32>
    %453 = vector.extract_strided_slice %440 {offsets = [0, 64], sizes = [1, 32], strides = [1, 1]} : vector<1x128xf32> to vector<1x32xf32>
    %454 = vector.extract_strided_slice %440 {offsets = [0, 96], sizes = [1, 32], strides = [1, 1]} : vector<1x128xf32> to vector<1x32xf32>
    %455 = arith.mulf %446, %454 : vector<1x32xf32>
    %456 = arith.addf %453, %455 : vector<1x32xf32>
    %457 = math.tanh %456 : vector<1x32xf32>
    %cst_123 = arith.constant 1.000000e+00 : f32
    %458 = vector.broadcast %cst_123 : f32 to vector<1x32xf32>
    %459 = arith.subf %458, %452 : vector<1x32xf32>
    %460 = arith.mulf %459, %457 : vector<1x32xf32>
    %461 = arith.mulf %452, %395 : vector<1x32xf32>
    %462 = arith.addf %460, %461 : vector<1x32xf32>
    %463 = arith.truncf %462 : vector<1x32xf32> to vector<1x32xbf16>
    %cst_124 = arith.constant dense<0.000000e+00> : vector<1x128xf32>
    %464 = tpu.matmul %463, %3, %cst_124 {dimension_numbers = #tpu.dot_dimension_numbers<[1], [0], [0], [1], [0, 0, 1, 1], [], []>} : vector<1x32xbf16>, vector<32x128xbf16>, vector<1x128xf32> -> vector<1x128xf32>
    %465 = arith.addf %464, %7 : vector<1x128xf32>
    %cst_125 = arith.constant dense<0xFF800000> : vector<1xf32>
    %466 = vector.multi_reduction <maximumf>, %465, %cst_125 [1] : vector<1x128xf32> to vector<1xf32>
    %467 = vector.shape_cast %466 : vector<1xf32> to vector<1x1xf32>
    %468 = vector.broadcast %467 : vector<1x1xf32> to vector<1x128xf32>
    %469 = arith.subf %465, %468 : vector<1x128xf32>
    %470 = math.exp %469 : vector<1x128xf32>
    %cst_126 = arith.constant dense<0.000000e+00> : vector<1xf32>
    %471 = vector.multi_reduction <add>, %470, %cst_126 [1] : vector<1x128xf32> to vector<1xf32>
    %472 = vector.shape_cast %471 : vector<1xf32> to vector<1x1xf32>
    %473 = math.log %472 : vector<1x1xf32>
    %474 = vector.broadcast %473 : vector<1x1xf32> to vector<1x128xf32>
    %475 = arith.subf %469, %474 : vector<1x128xf32>
    %476 = vector.extract_strided_slice %475 {offsets = [0, 0], sizes = [1, 32], strides = [1, 1]} : vector<1x128xf32> to vector<1x32xf32>
    %477 = vector.extract_strided_slice %427 {offsets = [0, 0], sizes = [1, 8], strides = [1, 1]} : vector<1x128xf32> to vector<1x8xf32>
    %478 = tpu.concatenate %476, %462, %477, %9 in 1 : vector<1x32xf32>, vector<1x32xf32>, vector<1x8xf32>, vector<1x56xf32> -> vector<1x128xf32>
    %c6_127 = arith.constant 6 : index
    %c0_128 = arith.constant 0 : index
    %479 = vector.load %arg5[%c6_127, %c0_128] : memref<8x128xf32, #tpu.memory_space<vmem>>, vector<1x128xf32>
    tpu.vector_store %arg5[%c6_127, %c0_128], %478 {strides = array<i32>} : memref<8x128xf32, #tpu.memory_space<vmem>>, vector<1x128xf32>,
    %c7 = arith.constant 7 : index
    %c0_129 = arith.constant 0 : index
    %480 = vector.load %arg2[%c7, %c0_129] : memref<8x32xbf16, #tpu.memory_space<vmem>>, vector<1x32xbf16>
    %481 = arith.truncf %462 : vector<1x32xf32> to vector<1x32xbf16>
    %482 = tpu.concatenate %480, %481 in 1 : vector<1x32xbf16>, vector<1x32xbf16> -> vector<1x64xbf16>
    %cst_130 = arith.constant dense<0.000000e+00> : vector<1x128xf32>
    %483 = tpu.matmul %482, %0, %cst_130 {dimension_numbers = #tpu.dot_dimension_numbers<[1], [0], [0], [1], [0, 0, 1, 1], [], []>} : vector<1x64xbf16>, vector<64x128xbf16>, vector<1x128xf32> -> vector<1x128xf32>
    %484 = arith.addf %483, %4 : vector<1x128xf32>
    %cst_131 = arith.constant dense<0xFF800000> : vector<1xf32>
    %485 = vector.multi_reduction <maximumf>, %484, %cst_131 [1] : vector<1x128xf32> to vector<1xf32>
    %486 = vector.shape_cast %485 : vector<1xf32> to vector<1x1xf32>
    %487 = vector.broadcast %486 : vector<1x1xf32> to vector<1x128xf32>
    %488 = arith.subf %484, %487 : vector<1x128xf32>
    %489 = math.exp %488 : vector<1x128xf32>
    %cst_132 = arith.constant dense<0.000000e+00> : vector<1xf32>
    %490 = vector.multi_reduction <add>, %489, %cst_132 [1] : vector<1x128xf32> to vector<1xf32>
    %491 = vector.shape_cast %490 : vector<1xf32> to vector<1x1xf32>
    %492 = tpu.reciprocal %491 {approx = true} : vector<1x1xf32> -> vector<1x1xf32>
    %493 = vector.broadcast %492 : vector<1x1xf32> to vector<1x128xf32>
    %494 = arith.mulf %489, %493 : vector<1x128xf32>
    %495 = arith.truncf %494 : vector<1x128xf32> to vector<1x128xbf16>
    %cst_133 = arith.constant dense<0.000000e+00> : vector<1x32xf32>
    %496 = tpu.matmul %495, %8, %cst_133 {dimension_numbers = #tpu.dot_dimension_numbers<[1], [0], [0], [1], [0, 0, 1, 1], [], []>} : vector<1x128xbf16>, vector<128x32xbf16>, vector<1x32xf32> -> vector<1x32xf32>
    %497 = arith.truncf %496 : vector<1x32xf32> to vector<1x32xbf16>
    %498 = tpu.concatenate %480, %497 in 1 : vector<1x32xbf16>, vector<1x32xbf16> -> vector<1x64xbf16>
    %cst_134 = arith.constant dense<0.000000e+00> : vector<1x128xf32>
    %499 = tpu.matmul %498, %1, %cst_134 {dimension_numbers = #tpu.dot_dimension_numbers<[1], [0], [0], [1], [0, 0, 1, 1], [], []>} : vector<1x64xbf16>, vector<64x128xbf16>, vector<1x128xf32> -> vector<1x128xf32>
    %500 = arith.addf %499, %5 : vector<1x128xf32>
    %501 = vector.extract_strided_slice %500 {offsets = [0, 0], sizes = [1, 32], strides = [1, 1]} : vector<1x128xf32> to vector<1x32xf32>
    %cst_135 = arith.constant 0.000000e+00 : f32
    %502 = vector.broadcast %cst_135 : f32 to vector<1x32xf32>
    %503 = arith.maximumf %501, %502 : vector<1x32xf32>
    %504 = arith.truncf %503 : vector<1x32xf32> to vector<1x32xbf16>
    %505 = tpu.concatenate %504, %481 in 1 : vector<1x32xbf16>, vector<1x32xbf16> -> vector<1x64xbf16>
    %cst_136 = arith.constant dense<0.000000e+00> : vector<1x128xf32>
    %506 = tpu.matmul %505, %2, %cst_136 {dimension_numbers = #tpu.dot_dimension_numbers<[1], [0], [0], [1], [0, 0, 1, 1], [], []>} : vector<1x64xbf16>, vector<64x128xbf16>, vector<1x128xf32> -> vector<1x128xf32>
    %507 = arith.addf %506, %6 : vector<1x128xf32>
    %508 = vector.extract_strided_slice %507 {offsets = [0, 0], sizes = [1, 32], strides = [1, 1]} : vector<1x128xf32> to vector<1x32xf32>
    %509 = arith.negf %508 : vector<1x32xf32>
    %510 = math.exp %509 : vector<1x32xf32>
    %cst_137 = arith.constant 1.000000e+00 : f32
    %511 = vector.broadcast %cst_137 : f32 to vector<1x32xf32>
    %512 = arith.addf %511, %510 : vector<1x32xf32>
    %513 = arith.divf %511, %512 : vector<1x32xf32>
    %514 = vector.extract_strided_slice %507 {offsets = [0, 32], sizes = [1, 32], strides = [1, 1]} : vector<1x128xf32> to vector<1x32xf32>
    %515 = arith.negf %514 : vector<1x32xf32>
    %516 = math.exp %515 : vector<1x32xf32>
    %cst_138 = arith.constant 1.000000e+00 : f32
    %517 = vector.broadcast %cst_138 : f32 to vector<1x32xf32>
    %518 = arith.addf %517, %516 : vector<1x32xf32>
    %519 = arith.divf %517, %518 : vector<1x32xf32>
    %520 = vector.extract_strided_slice %507 {offsets = [0, 64], sizes = [1, 32], strides = [1, 1]} : vector<1x128xf32> to vector<1x32xf32>
    %521 = vector.extract_strided_slice %507 {offsets = [0, 96], sizes = [1, 32], strides = [1, 1]} : vector<1x128xf32> to vector<1x32xf32>
    %522 = arith.mulf %513, %521 : vector<1x32xf32>
    %523 = arith.addf %520, %522 : vector<1x32xf32>
    %524 = math.tanh %523 : vector<1x32xf32>
    %cst_139 = arith.constant 1.000000e+00 : f32
    %525 = vector.broadcast %cst_139 : f32 to vector<1x32xf32>
    %526 = arith.subf %525, %519 : vector<1x32xf32>
    %527 = arith.mulf %526, %524 : vector<1x32xf32>
    %528 = arith.mulf %519, %462 : vector<1x32xf32>
    %529 = arith.addf %527, %528 : vector<1x32xf32>
    %530 = arith.truncf %529 : vector<1x32xf32> to vector<1x32xbf16>
    %cst_140 = arith.constant dense<0.000000e+00> : vector<1x128xf32>
    %531 = tpu.matmul %530, %3, %cst_140 {dimension_numbers = #tpu.dot_dimension_numbers<[1], [0], [0], [1], [0, 0, 1, 1], [], []>} : vector<1x32xbf16>, vector<32x128xbf16>, vector<1x128xf32> -> vector<1x128xf32>
    %532 = arith.addf %531, %7 : vector<1x128xf32>
    %cst_141 = arith.constant dense<0xFF800000> : vector<1xf32>
    %533 = vector.multi_reduction <maximumf>, %532, %cst_141 [1] : vector<1x128xf32> to vector<1xf32>
    %534 = vector.shape_cast %533 : vector<1xf32> to vector<1x1xf32>
    %535 = vector.broadcast %534 : vector<1x1xf32> to vector<1x128xf32>
    %536 = arith.subf %532, %535 : vector<1x128xf32>
    %537 = math.exp %536 : vector<1x128xf32>
    %cst_142 = arith.constant dense<0.000000e+00> : vector<1xf32>
    %538 = vector.multi_reduction <add>, %537, %cst_142 [1] : vector<1x128xf32> to vector<1xf32>
    %539 = vector.shape_cast %538 : vector<1xf32> to vector<1x1xf32>
    %540 = math.log %539 : vector<1x1xf32>
    %541 = vector.broadcast %540 : vector<1x1xf32> to vector<1x128xf32>
    %542 = arith.subf %536, %541 : vector<1x128xf32>
    %543 = vector.extract_strided_slice %542 {offsets = [0, 0], sizes = [1, 32], strides = [1, 1]} : vector<1x128xf32> to vector<1x32xf32>
    %544 = vector.extract_strided_slice %494 {offsets = [0, 0], sizes = [1, 8], strides = [1, 1]} : vector<1x128xf32> to vector<1x8xf32>
    %545 = tpu.concatenate %543, %529, %544, %9 in 1 : vector<1x32xf32>, vector<1x32xf32>, vector<1x8xf32>, vector<1x56xf32> -> vector<1x128xf32>
    %c7_143 = arith.constant 7 : index
    %c0_144 = arith.constant 0 : index
    %546 = vector.load %arg5[%c7_143, %c0_144] : memref<8x128xf32, #tpu.memory_space<vmem>>, vector<1x128xf32>
    tpu.vector_store %arg5[%c7_143, %c0_144], %545 {strides = array<i32>} : memref<8x128xf32, #tpu.memory_space<vmem>>, vector<1x128xf32>,
    return
  }
}

</mosaic_0001>

<bundles_post_ra>
// kernel: attn_decoder_decode.1
= control target key start
LH: loop header
LB: loop body
LE: loop exit
PB: predicated region body
PF: predicated region fallthrough
CT: control target
= control target key end

     0   :  { %s1929_s26 = smov 32   ;;  %vm77_vm0 = vcmask 261120   ;;  %vm105_vm1 = vcmask 523264   ;;  %vm121_vm2 = vcmask 1040384   ;;  %s1930_s20 = smov 64   ;;  %s2758_s3 = inlined_call_operand.vmem [shape: f32[1,32], index: 3, kind: input, shape index: {}]   ;;  %s2759_s0 = inlined_call_operand.vmem [shape: bf16[224,128], index: 0, kind: input, shape index: {}]   ;;  %s2760_s2 = inlined_call_operand.vmem [shape: bf16[8,32], index: 2, kind: input, shape index: {}]   ;;  %s2761_s1 = inlined_call_operand.vmem [shape: f32[8,128], index: 1, kind: input, shape index: {}]   ;;  %s2762_s4 = inlined_call_operand.vmem [shape: bf16[128,32], index: 4, kind: input, shape index: {}]   ;;  %s2763_s5 = inlined_call_operand.vmem [shape: f32[8,128], index: 5, kind: output, shape index: {}]  }
   0x1   :  { %v69_v0 = vld [vmem:[%s2758_s3] sm:$0x1]  ;;  %v1968_v1 = vld [vmem:[%s2759_s0 + $0x18] sm:$0xff]  ;;  %v1974_v3 = vld [vmem:[%s2759_s0 + $0x10] sm:$0xff]  ;;  %s1931_s21 = smov 96  }
   0x2   :  { %v71_v2 = vpack.c.bf16 %v69_v0, %v69_v0  ;;  %112 = vmatpush.bf16.msra.mxu0 %v1968_v1  ;;  %v1980_v6 = vld [vmem:[%s2759_s0 + $0x8] sm:$0xff]  ;;  %v1987_v7 = vld [vmem:[%s2759_s0] sm:$0xff]  ;;  %v2011_v16 = vld [vmem:[%s2762_s4 + $0x38] sm:$0xff] }
   0x3   :  { %v1993_v8 = vld [vmem:[%s2760_s2] sm:$0x1]  ;;  %182 = vmatpush.bf16.msra.mxu1 %v2011_v16  ;;  %v2017_v17 = vld [vmem:[%s2762_s4 + $0x30] sm:$0xff]  ;;  %v2023_v18 = vld [vmem:[%s2762_s4 + $0x28] sm:$0xff] }
   0x4   :  { %v73_v4 = vunpack.c.l.b16 %v71_v2  ;;  %v2004_v11 = vld [vmem:[%s2761_s1] sm:$0x1]  ;;  %v2035_v20 = vld [vmem:[%s2762_s4 + $0x18] sm:$0xff]  ;;  %v2042_v26 = vld [vmem:[%s2762_s4 + $0x10] sm:$0xff] }
   0x5   :  { %v2029_v19 = vld [vmem:[%s2762_s4 + $0x20] sm:$0xff]  ;;  %v2048_v27 = vld [vmem:[%s2762_s4 + $0x8] sm:$0xff]  ;;  %v2064_v33 = vld [vmem:[%s2759_s0 + $0x38] sm:$0xff] }
   0x6   :  { %v74_v5 = vpack.c.b16 %v73_v4, %v73_v4  ;;  %113 = vmatpush.bf16.msra.mxu0 %v1974_v3  ;;  %v2054_v28 = vld [vmem:[%s2762_s4] sm:$0xff]  ;;  %233 = vmatpush.bf16.msra.mxu2 %v2064_v33  ;;  %v2070_v34 = vld [vmem:[%s2759_s0 + $0x30] sm:$0xff]  ;;  %v2076_v35 = vld [vmem:[%s2759_s0 + $0x28] sm:$0xff] }
   0x7   :  { %183 = vmatpush.bf16.msra.mxu1 %v2017_v17  ;;  %v2082_v36 = vld [vmem:[%s2759_s0 + $0x20] sm:$0xff]  ;;  %v2093_v42 = vld [vmem:[%s2759_s0 + $0x58] sm:$0xff]  ;;  %v2099_v43 = vld [vmem:[%s2759_s0 + $0x50] sm:$0xff] }
   0x8   :  { %75 = vrot.lane.b32.xlu0 %v74_v5, %s1929_s26  ;;  %276 = vmatpush.bf16.msra.mxu3 %v2093_v42  ;;  %v2110_v46 = vld [vmem:[%s2759_s0 + $0x48] sm:$0xff]  ;;  %v2117_v47 = vld [vmem:[%s2759_s0 + $0x40] sm:$0xff] }
   0x9   :  { %v2136_v48 = vld [vmem:[%s2761_s1 + $0x1] sm:$0x1]  ;;  %v2153_v55 = vld [vmem:[%s2761_s1 + $0x2] sm:$0x1] }
   0xa   :  { %114 = vmatpush.bf16.msra.mxu0 %v1980_v6  ;;  %234 = vmatpush.bf16.msra.mxu2 %v2070_v34 }
   0xb   :  { %184 = vmatpush.bf16.msra.mxu1 %v2023_v18 }
   0xc   :  { %277 = vmatpush.bf16.msra.mxu3 %v2099_v43 }
   0xe   :  { %115 = vmatpush.bf16.msra.mxu0 %v1987_v7  ;;  %235 = vmatpush.bf16.msra.mxu2 %v2076_v35 }
   0xf   :  { %185 = vmatpush.bf16.msra.mxu1 %v2029_v19 }
  0x10   :  { %278 = vmatpush.bf16.msra.mxu3 %v2110_v46 }
  0x12   :  { %236 = vmatpush.bf16.msra.mxu2 %v2082_v36 }
  0x13   :  { %186 = vmatpush.bf16.msra.mxu1 %v2035_v20 }
  0x14   :  { %279 = vmatpush.bf16.msra.mxu3 %v2117_v47 }
  0x16   :  { %399 = vmatpush.bf16.msrb.mxu2 %v1968_v1 }
  0x17   :  { %187 = vmatpush.bf16.msra.mxu1 %v2042_v26 }
  0x18   :  { %420 = vmatpush.bf16.msrb.mxu3 %v2011_v16 }
  0x1a   :  { %400 = vmatpush.bf16.msrb.mxu2 %v1974_v3 }
  0x1b   :  { %188 = vmatpush.bf16.msra.mxu1 %v2048_v27 }
  0x1c   :  { %421 = vmatpush.bf16.msrb.mxu3 %v2017_v17 }
  0x1e   :  { %401 = vmatpush.bf16.msrb.mxu2 %v1980_v6 }
  0x1f   :  { %189 = vmatpush.bf16.msra.mxu1 %v2054_v28 }
  0x20   :  { %422 = vmatpush.bf16.msrb.mxu3 %v2023_v18 }
  0x22   :  { %402 = vmatpush.bf16.msrb.mxu2 %v1987_v7 }
  0x23   :  { %473 = vmatpush.bf16.msrb.mxu1 %v2093_v42 }
  0x24   :  { %423 = vmatpush.bf16.msrb.mxu3 %v2029_v19 }
  0x27   :  { %474 = vmatpush.bf16.msrb.mxu1 %v2099_v43 }
  0x28   :  { %424 = vmatpush.bf16.msrb.mxu3 %v2035_v20 }
  0x2b   :  { %475 = vmatpush.bf16.msrb.mxu1 %v2110_v46 }
  0x2c   :  { %425 = vmatpush.bf16.msrb.mxu3 %v2042_v26 }
  0x2f   :  { %476 = vmatpush.bf16.msrb.mxu1 %v2117_v47 }
  0x30   :  { %426 = vmatpush.bf16.msrb.mxu3 %v2048_v27 }
  0x34   :  { %427 = vmatpush.bf16.msrb.mxu3 %v2054_v28 }
  0x7a   :  { %v1995_v9 = vpop.permute.xlu0 %75 }
  0x7b   :  { %v80_v10 = vsel %vm77_vm0, %v1993_v8, %v1995_v9 }
  0x7c   :  { %1654 = vmatmul.msk.bf16.vlgmr.msra.gmra.mxu0 %vm105_vm1, %v80_v10 }
  0xf9   :  { %v117_v12 = vpop.f32.mrf.mxu0 }
  0xfa   :  { %v118_v13 = vadd.f32 %v117_v12, %v2004_v11 }
  0xfc   :  { %v122_v14 = vsel %vm121_vm2, %v118_v13, -inf }
  0xfd   :  { %123 = vmax.xlane.f32.xlu0 %v122_v14 }
 0x101   :  { %v119_v15 = vpop.f32.mrf.mxu0 }
 0x170   :  { %v124_v21 = vpop.xlane.xlu0 %123 }
 0x171   :  { %v125_v22 = vsub.f32 %v118_v13, %v124_v21 }
 0x173   :  { %v126_v23 = vmul.f32 1.442695, %v125_v22 }
 0x175   :  { %1792 = vpow2.f32 %v126_v23  ;;  %v1791_v23 = vld [vmem:[%s2758_s3] ss:$0 sm:$0xff] }
 0x17b   :  { %v1793_v24 = vpop.eup %1792 }
 0x17c   :  { %v128_v25 = vsel %vm121_vm2, %v1793_v24, 0.0 }
 0x17d   :  { %129 = vadd.xlane.f32.xlu1 %v128_v25  ;;  %v2172_v25 = vld [vmem:[%s2759_s0 + $0x60] sm:$0xff] }
 0x1f0   :  { %v130_v29 = vpop.xlane.xlu1 %129 }
 0x1f1   :  { %1794 = vrcp.f32 %v130_v29 }
 0x1f7   :  { %v1795_v30 = vpop.eup %1794 }
 0x1f8   :  { %v2057_v31 = vmul.f32 %v1795_v30, %v1793_v24  ;;  %v2166_v24 = vld [vmem:[%s2759_s0 + $0x68] sm:$0xff] }
 0x1f9   :  { %355 = vmatpush.bf16.msrb.mxu0 %v2166_v24 }
 0x1fa   :  { %v133_v32 = vpack.c.bf16 %v2057_v31, %v2057_v31 }
 0x1fc   :  { %190 = vmatmul.bf16.vlgmr.msra.gmra.mxu1 %v133_v32 }
 0x1fd   :  { %597 = vmatpush.bf16.msra.mxu1 %v2011_v16  ;;  %356 = vmatpush.bf16.msrb.mxu0 %v2172_v25 }
 0x201   :  { %598 = vmatpush.bf16.msra.mxu1 %v2017_v17  ;;  %453 = vmatpush.bf16.msra.mxu0 %v2064_v33 }
 0x205   :  { %599 = vmatpush.bf16.msra.mxu1 %v2023_v18  ;;  %454 = vmatpush.bf16.msra.mxu0 %v2070_v34 }
 0x209   :  { %600 = vmatpush.bf16.msra.mxu1 %v2029_v19  ;;  %455 = vmatpush.bf16.msra.mxu0 %v2076_v35 }
 0x20d   :  { %601 = vmatpush.bf16.msra.mxu1 %v2035_v20  ;;  %456 = vmatpush.bf16.msra.mxu0 %v2082_v36 }
 0x211   :  { %602 = vmatpush.bf16.msra.mxu1 %v2042_v26 }
 0x215   :  { %603 = vmatpush.bf16.msra.mxu1 %v2048_v27 }
 0x219   :  { %604 = vmatpush.bf16.msra.mxu1 %v2054_v28 }
 0x279   :  { %v191_v37 = vpop.f32.mrf.mxu1 }
 0x27a   :  { %v195_v38 = vpack.c.bf16 %v191_v37, %v191_v37 }
 0x27c   :  { %v197_v39 = vunpack.c.l.b16 %v195_v38 }
 0x27e   :  { %v198_v40 = vpack.c.b16 %v197_v39, %v197_v39 }
 0x280   :  { %199 = vrot.lane.b32.xlu1 %v198_v40, %s1929_s26 }
 0x281   :  { %v193_v41 = vpop.f32.mrf.mxu1 }
 0x2f2   :  { %v200_v44 = vpop.permute.xlu1 %199 }
 0x2f3   :  { %v202_v45 = vsel %vm77_vm0, %v1993_v8, %v200_v44 }
 0x2f4   :  { %1703 = vmatmul.msk.bf16.vlgmr.msra.gmra.mxu2 %vm105_vm1, %v202_v45  ;;  %v383_v45 = vld [vmem:[%s2760_s2] sm:$0x1] }
 0x2f5   :  { %535 = vmatpush.bf16.msra.mxu2 %v2166_v24 }
 0x2f9   :  { %536 = vmatpush.bf16.msra.mxu2 %v2172_v25 }
 0x377   :  { %v238_v49 = vpop.f32.mrf.mxu2 }
 0x378   :  { %v239_v50 = vadd.f32 %v238_v49, %v2136_v48 }
 0x37a   :  { %v242_v51 = vmax.f32 %v239_v50, 0.0 }
 0x37c   :  { %v243_v52 = vpack.c.bf16 %v242_v51, %v242_v51 }
 0x37e   :  { %v245_v53 = vsel %vm77_vm0, %v243_v52, %v1995_v9 }
 0x37f   :  { %v240_v54 = vpop.f32.mrf.mxu2  ;;  %1720 = vmatmul.msk.bf16.vlgmr.msra.gmra.mxu3 %vm105_vm1, %v245_v53 }
 0x380   :  { %648 = vmatpush.bf16.msra.mxu3 %v2093_v42 }
 0x384   :  { %649 = vmatpush.bf16.msra.mxu3 %v2099_v43 }
 0x388   :  { %650 = vmatpush.bf16.msra.mxu3 %v2110_v46 }
 0x38c   :  { %651 = vmatpush.bf16.msra.mxu3 %v2117_v47 }
 0x402   :  { %v281_v56 = vpop.f32.mrf.mxu3 }
 0x403   :  { %v282_v57 = vadd.f32 %v281_v56, %v2153_v55 }
 0x405   :  { %305 = vrot.lane.b32.xlu2 %v282_v57, %s1929_s26  ;;  %v1721_v59 = vmul.f32 -1.442695, %v282_v57 }
 0x407   :  { %1796 = vpow2.f32 %v1721_v59 }
 0x40a   :  { %v283_v58 = vpop.f32.mrf.mxu3 }
 0x40d   :  { %v1797_v60 = vpop.eup %1796 }
 0x40e   :  { %v288_v61 = vadd.f32 1.0, %v1797_v60 }
 0x410   :  { %1798 = vrcp.f32 %v288_v61  ;;  %v300_v5 = vand.u32 2147483648, %v288_v61  ;;  %vm294_vm4 = vweird.f32 %v288_v61  ;;  %v298_v8 = vand.u32 2147483647, %v288_v61 }
 0x412   :  { %v301_v10 = vor.u32 1.1754944e-38, %v300_v5  ;;  %vm299_vm6 = vcmp.eq.f32.partialorder %v298_v8, 8.507059e+37 }
 0x416   :  { %v1799_v62 = vpop.eup %1798 }
 0x417   :  { %v290_v63 = vmul.f32 %v1799_v62, %v288_v61  ;;  %vm295_vm3 = vweird.f32 %v1799_v62 }
 0x418   :  { %vm296_vm5 = vmor %vm294_vm4, %vm295_vm3 }
 0x419   :  { %v291_v0 = vsub.f32 1.0, %v290_v63 }
 0x41b   :  { %v292_v2 = vmul.f32 %v1799_v62, %v291_v0 }
 0x41d   :  { %v293_v4 = vadd.f32 %v1799_v62, %v292_v2 }
 0x41f   :  { %v297_v9 = vsel %vm296_vm5, %v1799_v62, %v293_v4 }
 0x420   :  { %v302_v13 = vsel %vm299_vm6, %v301_v10, %v297_v9 }
 0x421   :  { %v315_v30 = vsub.f32 1.0, %v302_v13 }
 0x45f   :  { %v306_v12 = vpop.permute.xlu2 %305 }
 0x460   :  { %v308_v14 = vmul.f32 %v306_v12, %v302_v13 }
 0x462   :  { %310 = vrot.lane.b32.xlu2 %v308_v14, %s1930_s20 }
 0x4bc   :  { %v311_v15 = vpop.permute.xlu2 %310 }
 0x4bd   :  { %v313_v21 = vadd.f32 %v311_v15, %v282_v57 }
 0x4bf   :  { %1800 = vtanh.f32 %v313_v21 }
 0x4c5   :  { %v1801_v22 = vpop.eup %1800 }
 0x4c6   :  { %317 = vrot.lane.b32.xlu2 %v1801_v22, %s1931_s21 }
 0x4ce   :  { %323 = vrot.lane.b32.xlu2 %v1791_v23, %s1929_s26 }
 0x520   :  { %v318_v29 = vpop.permute.xlu2 %317 }
 0x521   :  { %v320_v37 = vmul.f32 %v318_v29, %v315_v30 }
 0x528   :  { %v324_v32 = vpop.permute.xlu2 %323 }
 0x529   :  { %v326_v38 = vmul.f32 %v324_v32, %v302_v13 }
 0x52b   :  { %v2180_v39 = vadd.f32 %v326_v38, %v320_v37 }
 0x52d   :  { %v2185_v40 = vpack.c.bf16 %v2180_v39, %v2180_v39 }
 0x52f   :  { %v330_v41 = vunpack.c.l.b16 %v2185_v40 }
 0x531   :  { %v331_v44 = vpack.c.b16 %v330_v41, %v330_v41 }
 0x533   :  { %332 = vrot.lane.b32.xlu0 %v331_v44, %s1931_s21  ;;  %v385_v49 = vshll.u32 %v331_v44, 16 }
 0x535   :  { %v389_v50 = vsel %vm77_vm0, %v383_v45, %v385_v49 }
 0x536   :  { %v390_v51 = vshrl.u32 %v389_v50, 16 }
 0x538   :  { %1731 = vmatmul.msk.bf16.vlgmr.msrb.gmra.mxu2 %vm105_vm1, %v390_v51 }
 0x539   :  { %628 = vmatpush.bf16.msrb.mxu2 %v2064_v33 }
 0x53d   :  { %629 = vmatpush.bf16.msrb.mxu2 %v2070_v34 }
 0x541   :  { %630 = vmatpush.bf16.msrb.mxu2 %v2076_v35 }
 0x545   :  { %631 = vmatpush.bf16.msrb.mxu2 %v2082_v36 }
 0x5a5   :  { %v333_v52 = vpop.permute.xlu0 %332 }
 0x5a6   :  { %1730 = vmatmul.msk.bf16.vlgmr.msrb.gmra.mxu0 %vm77_vm0, %v333_v52 }
 0x5a7   :  { %576 = vmatpush.bf16.msrb.mxu0 %v1968_v1 }
 0x5ab   :  { %577 = vmatpush.bf16.msrb.mxu0 %v1974_v3 }
 0x5af   :  { %578 = vmatpush.bf16.msrb.mxu0 %v1980_v6 }
 0x5b3   :  { %579 = vmatpush.bf16.msrb.mxu0 %v1987_v7 }
 0x5bb   :  { %v404_v53 = vpop.f32.mrf.mxu2 }
 0x5bc   :  { %v405_v54 = vadd.f32 %v404_v53, %v2004_v11 }
 0x5be   :  { %v408_v56 = vsel %vm121_vm2, %v405_v54, -inf }
 0x5bf   :  { %409 = vmax.xlane.f32.xlu2 %v408_v56 }
 0x5c3   :  { %v406_v57 = vpop.f32.mrf.mxu2 }
 0x623   :  { %v2205_v58 = vpop.f32.mrf.mxu0 }
 0x62b   :  { %v360_v59 = vpop.f32.mrf.mxu0 }
 0x632   :  { %v410_v60 = vpop.xlane.xlu2 %409 }
 0x633   :  { %v411_v61 = vsub.f32 %v405_v54, %v410_v60 }
 0x635   :  { %v412_v62 = vmul.f32 1.442695, %v411_v61 }
 0x637   :  { %1802 = vpow2.f32 %v412_v62 }
 0x63d   :  { %v1803_v63 = vpop.eup %1802 }
 0x63e   :  { %v414_v0 = vsel %vm121_vm2, %v1803_v63, 0.0 }
 0x63f   :  { %415 = vadd.xlane.f32.xlu1 %v414_v0 }
 0x6b2   :  { %v416_v2 = vpop.xlane.xlu1 %415 }
 0x6b3   :  { %1804 = vrcp.f32 %v416_v2 }
 0x6b9   :  { %v1805_v4 = vpop.eup %1804 }
 0x6ba   :  { %v2208_v5 = vmul.f32 %v1805_v4, %v1803_v63 }
 0x6bc   :  { %v419_v8 = vpack.c.bf16 %v2208_v5, %v2208_v5 }
 0x6be   :  { %428 = vmatmul.bf16.vlgmr.msrb.gmra.mxu3 %v419_v8 }
 0x6bf   :  { %776 = vmatpush.bf16.msrb.mxu3 %v2011_v16 }
 0x6c3   :  { %777 = vmatpush.bf16.msrb.mxu3 %v2017_v17 }
 0x6c7   :  { %778 = vmatpush.bf16.msrb.mxu3 %v2023_v18 }
 0x6cb   :  { %779 = vmatpush.bf16.msrb.mxu3 %v2029_v19 }
 0x6cf   :  { %780 = vmatpush.bf16.msrb.mxu3 %v2035_v20 }
 0x6d3   :  { %781 = vmatpush.bf16.msrb.mxu3 %v2042_v26 }
 0x6d7   :  { %782 = vmatpush.bf16.msrb.mxu3 %v2048_v27 }
 0x6db   :  { %783 = vmatpush.bf16.msrb.mxu3 %v2054_v28 }
 0x741   :  { %v429_v9 = vpop.f32.mrf.mxu3 }
 0x742   :  { %v433_v10 = vpack.c.bf16 %v429_v9, %v429_v9 }
 0x744   :  { %v435_v12 = vunpack.c.l.b16 %v433_v10 }
 0x746   :  { %v436_v13 = vpack.c.b16 %v435_v12, %v435_v12 }
 0x748   :  { %v438_v14 = vshll.u32 %v436_v13, 16 }
 0x749   :  { %v431_v15 = vpop.f32.mrf.mxu3 }
 0x74a   :  { %440 = vrot.lane.b32.xlu0 %v438_v14, %s1929_s26 }
 0x7bc   :  { %v441_v21 = vpop.permute.xlu0 %440 }
 0x7bd   :  { %v443_v22 = vsel %vm77_vm0, %v383_v45, %v441_v21 }
 0x7be   :  { %v444_v23 = vshrl.u32 %v443_v22, 16 }
 0x7c0   :  { %1732 = vmatmul.msk.bf16.vlgmr.msra.gmra.mxu0 %vm105_vm1, %v444_v23 }
 0x7c1   :  { %710 = vmatpush.bf16.msra.mxu0 %v2166_v24 }
 0x7c5   :  { %711 = vmatpush.bf16.msra.mxu0 %v2172_v25 }
 0x83d   :  { %v458_v29 = vpop.f32.mrf.mxu0 }
 0x83e   :  { %v459_v30 = vadd.f32 %v458_v29, %v2136_v48  ;;  %v562_v29 = vld [vmem:[%s2760_s2] sm:$0x2] }
 0x840   :  { %v462_v32 = vmax.f32 %v459_v30, 0.0 }
 0x842   :  { %v463_v37 = vpack.c.bf16 %v462_v32, %v462_v32 }
 0x844   :  { %v466_v38 = vsel %vm77_vm0, %v463_v37, %v2185_v40 }
 0x845   :  { %v460_v41 = vpop.f32.mrf.mxu0  ;;  %1733 = vmatmul.msk.bf16.vlgmr.msrb.gmra.mxu1 %vm105_vm1, %v466_v38 }
 0x846   :  { %831 = vmatpush.bf16.msrb.mxu1 %v2093_v42 }
 0x84a   :  { %832 = vmatpush.bf16.msrb.mxu1 %v2099_v43 }
 0x84e   :  { %833 = vmatpush.bf16.msrb.mxu1 %v2110_v46 }
 0x852   :  { %834 = vmatpush.bf16.msrb.mxu1 %v2117_v47 }
 0x8c2   :  { %v478_v44 = vpop.f32.mrf.mxu1 }
 0x8c3   :  { %v479_v45 = vadd.f32 %v478_v44, %v2153_v55 }
 0x8c5   :  { %502 = vrot.lane.b32.xlu2 %v479_v45, %s1929_s26  ;;  %v1734_v50 = vmul.f32 -1.442695, %v479_v45 }
 0x8c7   :  { %1806 = vpow2.f32 %v1734_v50 }
 0x8ca   :  { %v480_v49 = vpop.f32.mrf.mxu1 }
 0x8cd   :  { %v1807_v40 = vpop.eup %1806 }
 0x8ce   :  { %v485_v51 = vadd.f32 1.0, %v1807_v40 }
 0x8d0   :  { %1808 = vrcp.f32 %v485_v51  ;;  %v497_v59 = vand.u32 2147483648, %v485_v51  ;;  %vm491_vm8 = vweird.f32 %v485_v51  ;;  %v495_v60 = vand.u32 2147483647, %v485_v51 }
 0x8d2   :  { %v498_v62 = vor.u32 1.1754944e-38, %v497_v59  ;;  %vm496_vm10 = vcmp.eq.f32.partialorder %v495_v60, 8.507059e+37 }
 0x8d6   :  { %v1809_v52 = vpop.eup %1808 }
 0x8d7   :  { %v487_v53 = vmul.f32 %v1809_v52, %v485_v51  ;;  %vm492_vm7 = vweird.f32 %v1809_v52 }
 0x8d8   :  { %vm493_vm9 = vmor %vm491_vm8, %vm492_vm7 }
 0x8d9   :  { %v488_v54 = vsub.f32 1.0, %v487_v53 }
 0x8db   :  { %v489_v56 = vmul.f32 %v1809_v52, %v488_v54 }
 0x8dd   :  { %v490_v57 = vadd.f32 %v1809_v52, %v489_v56 }
 0x8df   :  { %v494_v61 = vsel %vm493_vm9, %v1809_v52, %v490_v57 }
 0x8e0   :  { %v499_v0 = vsel %vm496_vm10, %v498_v62, %v494_v61 }
 0x8e1   :  { %v512_v10 = vsub.f32 1.0, %v499_v0  ;;  %v518_v13 = vmul.f32 %v499_v0, %v2180_v39 }
 0x91f   :  { %v503_v63 = vpop.permute.xlu2 %502 }
 0x920   :  { %v505_v2 = vmul.f32 %v503_v63, %v499_v0 }
 0x922   :  { %507 = vrot.lane.b32.xlu1 %v505_v2, %s1930_s20 }
 0x994   :  { %v508_v4 = vpop.permute.xlu1 %507 }
 0x995   :  { %v510_v8 = vadd.f32 %v508_v4, %v479_v45 }
 0x997   :  { %1810 = vtanh.f32 %v510_v8 }
 0x99d   :  { %v1811_v9 = vpop.eup %1810 }
 0x99e   :  { %514 = vrot.lane.b32.xlu0 %v1811_v9, %s1931_s21 }
 0xa10   :  { %v515_v12 = vpop.permute.xlu0 %514 }
 0xa11   :  { %v517_v14 = vmul.f32 %v515_v12, %v512_v10 }
 0xa13   :  { %v2238_v15 = vadd.f32 %v518_v13, %v517_v14 }
 0xa15   :  { %v2242_v21 = vpack.c.bf16 %v2238_v15, %v2238_v15 }
 0xa17   :  { %v522_v22 = vunpack.c.l.b16 %v2242_v21 }
 0xa19   :  { %v523_v23 = vpack.c.b16 %v522_v22, %v522_v22 }
 0xa1b   :  { %524 = vrot.lane.b32.xlu1 %v523_v23, %s1931_s21  ;;  %v563_v30 = vrot.slane %v523_v23, 7 }
 0xa1d   :  { %v566_v32 = vsel %vm77_vm0, %v562_v29, %v563_v30 }
 0xa1e   :  { %v568_v37 = vrot.slane %v566_v32, 1 }
 0xa20   :  { %1736 = vmatmul.msk.bf16.vlgmr.msrb.gmra.mxu0 %vm105_vm1, %v568_v37 }
 0xa21   :  { %811 = vmatpush.bf16.msrb.mxu0 %v2064_v33 }
 0xa25   :  { %812 = vmatpush.bf16.msrb.mxu0 %v2070_v34 }
 0xa29   :  { %813 = vmatpush.bf16.msrb.mxu0 %v2076_v35 }
 0xa2d   :  { %814 = vmatpush.bf16.msrb.mxu0 %v2082_v36 }
 0xa8d   :  { %v525_v38 = vpop.permute.xlu1 %524 }
 0xa8e   :  { %1735 = vmatmul.msk.bf16.vlgmr.msra.gmra.mxu2 %vm77_vm0, %v525_v38 }
 0xa8f   :  { %755 = vmatpush.bf16.msra.mxu2 %v1968_v1 }
 0xa93   :  { %756 = vmatpush.bf16.msra.mxu2 %v1974_v3 }
 0xa97   :  { %757 = vmatpush.bf16.msra.mxu2 %v1980_v6 }
 0xa9b   :  { %758 = vmatpush.bf16.msra.mxu2 %v1987_v7 }
 0xa9d   :  { %v581_v41 = vpop.f32.mrf.mxu0 }
 0xa9e   :  { %v582_v44 = vadd.f32 %v581_v41, %v2004_v11 }
 0xaa0   :  { %v585_v45 = vsel %vm121_vm2, %v582_v44, -inf }
 0xaa1   :  { %586 = vmax.xlane.f32.xlu0 %v585_v45 }
 0xaa5   :  { %v583_v49 = vpop.f32.mrf.mxu0 }
 0xb11   :  { %v2262_v50 = vpop.f32.mrf.mxu2 }
 0xb14   :  { %v587_v40 = vpop.xlane.xlu0 %586 }
 0xb15   :  { %v588_v51 = vsub.f32 %v582_v44, %v587_v40 }
 0xb17   :  { %v589_v52 = vmul.f32 1.442695, %v588_v51 }
 0xb19   :  { %1812 = vpow2.f32 %v589_v52  ;;  %v540_v53 = vpop.f32.mrf.mxu2 }
 0xb1f   :  { %v1813_v54 = vpop.eup %1812 }
 0xb20   :  { %v591_v56 = vsel %vm121_vm2, %v1813_v54, 0.0 }
 0xb21   :  { %592 = vadd.xlane.f32.xlu2 %v591_v56 }
 0xb94   :  { %v593_v57 = vpop.xlane.xlu2 %592 }
 0xb95   :  { %1814 = vrcp.f32 %v593_v57 }
 0xb9b   :  { %v1815_v59 = vpop.eup %1814 }
 0xb9c   :  { %v2265_v60 = vmul.f32 %v1815_v59, %v1813_v54 }
 0xb9e   :  { %v596_v61 = vpack.c.bf16 %v2265_v60, %v2265_v60 }
 0xba0   :  { %605 = vmatmul.bf16.vlgmr.msra.gmra.mxu1 %v596_v61 }
 0xba1   :  { %955 = vmatpush.bf16.msra.mxu1 %v2011_v16 }
 0xba5   :  { %956 = vmatpush.bf16.msra.mxu1 %v2017_v17 }
 0xba9   :  { %957 = vmatpush.bf16.msra.mxu1 %v2023_v18 }
 0xbad   :  { %958 = vmatpush.bf16.msra.mxu1 %v2029_v19 }
 0xbb1   :  { %959 = vmatpush.bf16.msra.mxu1 %v2035_v20 }
 0xbb5   :  { %960 = vmatpush.bf16.msra.mxu1 %v2042_v26 }
 0xbb9   :  { %961 = vmatpush.bf16.msra.mxu1 %v2048_v27 }
 0xbbd   :  { %962 = vmatpush.bf16.msra.mxu1 %v2054_v28 }
 0xc1d   :  { %v606_v62 = vpop.f32.mrf.mxu1 }
 0xc1e   :  { %v610_v63 = vpack.c.bf16 %v606_v62, %v606_v62 }
 0xc20   :  { %v612_v0 = vunpack.c.l.b16 %v610_v63 }
 0xc22   :  { %v613_v2 = vpack.c.b16 %v612_v0, %v612_v0 }
 0xc24   :  { %v614_v4 = vrot.slane %v613_v2, 7 }
 0xc25   :  { %v608_v8 = vpop.f32.mrf.mxu1 }
 0xc26   :  { %615 = vrot.lane.b32.xlu1 %v614_v4, %s1929_s26 }
 0xc98   :  { %v616_v9 = vpop.permute.xlu1 %615 }
 0xc99   :  { %v618_v10 = vsel %vm77_vm0, %v562_v29, %v616_v9 }
 0xc9a   :  { %v620_v12 = vrot.slane %v618_v10, 1 }
 0xc9c   :  { %1737 = vmatmul.msk.bf16.vlgmr.msrb.gmra.mxu2 %vm105_vm1, %v620_v12 }
 0xc9d   :  { %893 = vmatpush.bf16.msrb.mxu2 %v2166_v24 }
 0xca1   :  { %894 = vmatpush.bf16.msrb.mxu2 %v2172_v25 }
 0xd1f   :  { %v633_v13 = vpop.f32.mrf.mxu2 }
 0xd20   :  { %v634_v14 = vadd.f32 %v633_v13, %v2136_v48 }
 0xd22   :  { %v637_v22 = vmax.f32 %v634_v14, 0.0 }
 0xd24   :  { %v638_v23 = vpack.c.bf16 %v637_v22, %v637_v22 }
 0xd26   :  { %v641_v30 = vsel %vm77_vm0, %v638_v23, %v2242_v21 }
 0xd27   :  { %v635_v32 = vpop.f32.mrf.mxu2  ;;  %1738 = vmatmul.msk.bf16.vlgmr.msra.gmra.mxu3 %vm105_vm1, %v641_v30  ;;  %v737_v30 = vld [vmem:[%s2760_s2] sm:$0x2] }
 0xd28   :  { %1006 = vmatpush.bf16.msra.mxu3 %v2093_v42 }
 0xd2c   :  { %1007 = vmatpush.bf16.msra.mxu3 %v2099_v43 }
 0xd30   :  { %1008 = vmatpush.bf16.msra.mxu3 %v2110_v46 }
 0xd34   :  { %1009 = vmatpush.bf16.msra.mxu3 %v2117_v47 }
 0xdaa   :  { %v653_v29 = vpop.f32.mrf.mxu3 }
 0xdab   :  { %v654_v37 = vadd.f32 %v653_v29, %v2153_v55 }
 0xdad   :  { %677 = vrot.lane.b32.xlu1 %v654_v37, %s1929_s26  ;;  %v1739_v41 = vmul.f32 -1.442695, %v654_v37 }
 0xdaf   :  { %1816 = vpow2.f32 %v1739_v41 }
 0xdb2   :  { %v655_v38 = vpop.f32.mrf.mxu3 }
 0xdb5   :  { %v1817_v21 = vpop.eup %1816 }
 0xdb6   :  { %v660_v44 = vadd.f32 1.0, %v1817_v21 }
 0xdb8   :  { %1818 = vrcp.f32 %v660_v44  ;;  %v672_v53 = vand.u32 2147483648, %v660_v44  ;;  %vm666_vm12 = vweird.f32 %v660_v44  ;;  %v670_v54 = vand.u32 2147483647, %v660_v44 }
 0xdba   :  { %v673_v57 = vor.u32 1.1754944e-38, %v672_v53  ;;  %vm671_vm14 = vcmp.eq.f32.partialorder %v670_v54, 8.507059e+37 }
 0xdbe   :  { %v1819_v45 = vpop.eup %1818 }
 0xdbf   :  { %v662_v49 = vmul.f32 %v1819_v45, %v660_v44  ;;  %vm667_vm11 = vweird.f32 %v1819_v45 }
 0xdc0   :  { %vm668_vm13 = vmor %vm666_vm12, %vm667_vm11 }
 0xdc1   :  { %v663_v40 = vsub.f32 1.0, %v662_v49 }
 0xdc3   :  { %v664_v51 = vmul.f32 %v1819_v45, %v663_v40 }
 0xdc5   :  { %v665_v52 = vadd.f32 %v1819_v45, %v664_v51 }
 0xdc7   :  { %v669_v56 = vsel %vm668_vm13, %v1819_v45, %v665_v52 }
 0xdc8   :  { %v674_v61 = vsel %vm671_vm14, %v673_v57, %v669_v56 }
 0xdc9   :  { %v687_v4 = vsub.f32 1.0, %v674_v61  ;;  %v693_v9 = vmul.f32 %v674_v61, %v2238_v15 }
 0xe1f   :  { %v678_v59 = vpop.permute.xlu1 %677 }
 0xe20   :  { %v680_v62 = vmul.f32 %v678_v59, %v674_v61 }
 0xe22   :  { %682 = vrot.lane.b32.xlu1 %v680_v62, %s1930_s20 }
 0xe94   :  { %v683_v63 = vpop.permute.xlu1 %682 }
 0xe95   :  { %v685_v0 = vadd.f32 %v683_v63, %v654_v37 }
 0xe97   :  { %1820 = vtanh.f32 %v685_v0 }
 0xe9d   :  { %v1821_v2 = vpop.eup %1820 }
 0xe9e   :  { %689 = vrot.lane.b32.xlu0 %v1821_v2, %s1931_s21 }
 0xf10   :  { %v690_v8 = vpop.permute.xlu0 %689 }
 0xf11   :  { %v692_v10 = vmul.f32 %v690_v8, %v687_v4 }
 0xf13   :  { %v2295_v12 = vadd.f32 %v693_v9, %v692_v10 }
 0xf15   :  { %v2299_v13 = vpack.c.bf16 %v2295_v12, %v2295_v12 }
 0xf17   :  { %v697_v14 = vunpack.c.l.b16 %v2299_v13 }
 0xf19   :  { %v698_v22 = vpack.c.b16 %v697_v14, %v697_v14 }
 0xf1b   :  { %v739_v23 = vshll.u32 %v698_v22, 16 }
 0xf1d   :  { %v741_v32 = vrot.slane %v739_v23, 7 }
 0xf1f   :  { %v744_v29 = vsel %vm77_vm0, %v737_v30, %v741_v32 }
 0xf20   :  { %v745_v37 = vshrl.u32 %v744_v29, 16 }
 0xf22   :  { %v747_v38 = vrot.slane %v745_v37, 1 }
 0xf24   :  { %1741 = vmatmul.msk.bf16.vlgmr.msra.gmra.mxu2 %vm105_vm1, %v747_v38 }
 0xf25   :  { %986 = vmatpush.bf16.msra.mxu2 %v2064_v33 }
 0xf29   :  { %987 = vmatpush.bf16.msra.mxu2 %v2070_v34 }
 0xf2d   :  { %988 = vmatpush.bf16.msra.mxu2 %v2076_v35 }
 0xf31   :  { %989 = vmatpush.bf16.msra.mxu2 %v2082_v36 }
 0xfa7   :  { %v760_v41 = vpop.f32.mrf.mxu2 }
 0xfa8   :  { %v761_v21 = vadd.f32 %v760_v41, %v2004_v11 }
 0xfaa   :  { %v764_v44 = vsel %vm121_vm2, %v761_v21, -inf }
 0xfab   :  { %765 = vmax.xlane.f32.xlu1 %v764_v44 }
 0xfaf   :  { %v762_v45 = vpop.f32.mrf.mxu2 }
0x101e   :  { %v766_v49 = vpop.xlane.xlu1 %765 }
0x101f   :  { %v767_v40 = vsub.f32 %v761_v21, %v766_v49 }
0x1021   :  { %v768_v51 = vmul.f32 1.442695, %v767_v40 }
0x1023   :  { %1822 = vpow2.f32 %v768_v51 }
0x1029   :  { %v1823_v52 = vpop.eup %1822 }
0x102a   :  { %v770_v53 = vsel %vm121_vm2, %v1823_v52, 0.0 }
0x102b   :  { %771 = vadd.xlane.f32.xlu2 %v770_v53 }
0x1043   :  { %699 = vrot.lane.b32.xlu2 %v698_v22, %s1931_s21 }
0x109e   :  { %v772_v54 = vpop.xlane.xlu2 %771 }
0x109f   :  { %1824 = vrcp.f32 %v772_v54 }
0x10a5   :  { %v1825_v56 = vpop.eup %1824 }
0x10a6   :  { %v2315_v57 = vmul.f32 %v1825_v56, %v1823_v52  ;;  %v700_v59 = vpop.permute.xlu2 %699 }
0x10a7   :  { %1740 = vmatmul.msk.bf16.vlgmr.msra.gmra.mxu0 %vm77_vm0, %v700_v59 }
0x10a8   :  { %v775_v61 = vpack.c.bf16 %v2315_v57, %v2315_v57  ;;  %934 = vmatpush.bf16.msra.mxu0 %v1968_v1 }
0x10aa   :  { %784 = vmatmul.bf16.vlgmr.msrb.gmra.mxu3 %v775_v61 }
0x10ab   :  { %1134 = vmatpush.bf16.msrb.mxu3 %v2011_v16 }
0x10ac   :  { %935 = vmatpush.bf16.msra.mxu0 %v1974_v3 }
0x10af   :  { %1135 = vmatpush.bf16.msrb.mxu3 %v2017_v17 }
0x10b0   :  { %936 = vmatpush.bf16.msra.mxu0 %v1980_v6 }
0x10b3   :  { %1136 = vmatpush.bf16.msrb.mxu3 %v2023_v18 }
0x10b4   :  { %937 = vmatpush.bf16.msra.mxu0 %v1987_v7 }
0x10b7   :  { %1137 = vmatpush.bf16.msrb.mxu3 %v2029_v19 }
0x10bb   :  { %1138 = vmatpush.bf16.msrb.mxu3 %v2035_v20 }
0x10bf   :  { %1139 = vmatpush.bf16.msrb.mxu3 %v2042_v26 }
0x10c3   :  { %1140 = vmatpush.bf16.msrb.mxu3 %v2048_v27 }
0x10c7   :  { %1141 = vmatpush.bf16.msrb.mxu3 %v2054_v28 }
0x1124   :  { %v2332_v62 = vpop.f32.mrf.mxu0 }
0x112c   :  { %v715_v63 = vpop.f32.mrf.mxu0 }
0x112d   :  { %v785_v0 = vpop.f32.mrf.mxu3 }
0x112e   :  { %v789_v2 = vpack.c.bf16 %v785_v0, %v785_v0 }
0x1130   :  { %v791_v4 = vunpack.c.l.b16 %v789_v2 }
0x1132   :  { %v792_v8 = vpack.c.b16 %v791_v4, %v791_v4 }
0x1134   :  { %v794_v9 = vshll.u32 %v792_v8, 16 }
0x1135   :  { %v787_v10 = vpop.f32.mrf.mxu3 }
0x1136   :  { %v796_v14 = vrot.slane %v794_v9, 7 }
0x1138   :  { %797 = vrot.lane.b32.xlu0 %v796_v14, %s1929_s26 }
0x11aa   :  { %v798_v22 = vpop.permute.xlu0 %797 }
0x11ab   :  { %v800_v23 = vsel %vm77_vm0, %v737_v30, %v798_v22 }
0x11ac   :  { %v801_v32 = vshrl.u32 %v800_v23, 16 }
0x11ae   :  { %v803_v29 = vrot.slane %v801_v32, 1 }
0x11b0   :  { %1742 = vmatmul.msk.bf16.vlgmr.msrb.gmra.mxu0 %vm105_vm1, %v803_v29 }
0x11b1   :  { %1068 = vmatpush.bf16.msrb.mxu0 %v2166_v24 }
0x11b5   :  { %1069 = vmatpush.bf16.msrb.mxu0 %v2172_v25 }
0x122d   :  { %v816_v37 = vpop.f32.mrf.mxu0 }
0x122e   :  { %v817_v38 = vadd.f32 %v816_v37, %v2136_v48 }
0x1230   :  { %v820_v41 = vmax.f32 %v817_v38, 0.0 }
0x1232   :  { %v821_v21 = vpack.c.bf16 %v820_v41, %v820_v41 }
0x1234   :  { %v824_v44 = vsel %vm77_vm0, %v821_v21, %v2299_v13 }
0x1235   :  { %v818_v45 = vpop.f32.mrf.mxu0  ;;  %1743 = vmatmul.msk.bf16.vlgmr.msrb.gmra.mxu1 %vm105_vm1, %v824_v44 }
0x1236   :  { %1189 = vmatpush.bf16.msrb.mxu1 %v2093_v42 }
0x123a   :  { %1190 = vmatpush.bf16.msrb.mxu1 %v2099_v43 }
0x123e   :  { %1191 = vmatpush.bf16.msrb.mxu1 %v2110_v46 }
0x1242   :  { %1192 = vmatpush.bf16.msrb.mxu1 %v2117_v47 }
0x12b2   :  { %v836_v30 = vpop.f32.mrf.mxu1 }
0x12b3   :  { %v837_v49 = vadd.f32 %v836_v30, %v2153_v55  ;;  %v920_v30 = vld [vmem:[%s2760_s2] sm:$0x4] }
0x12b5   :  { %860 = vrot.lane.b32.xlu0 %v837_v49, %s1929_s26  ;;  %v1744_v51 = vmul.f32 -1.442695, %v837_v49 }
0x12b7   :  { %1826 = vpow2.f32 %v1744_v51 }
0x12ba   :  { %v838_v40 = vpop.f32.mrf.mxu1 }
0x12bd   :  { %v1827_v13 = vpop.eup %1826 }
0x12be   :  { %v843_v52 = vadd.f32 1.0, %v1827_v13 }
0x12c0   :  { %1828 = vrcp.f32 %v843_v52  ;;  %v855_v63 = vand.u32 2147483648, %v843_v52  ;;  %vm849_vm3 = vweird.f32 %v843_v52  ;;  %v853_v0 = vand.u32 2147483647, %v843_v52 }
0x12c2   :  { %v856_v4 = vor.u32 1.1754944e-38, %v855_v63  ;;  %vm854_vm5 = vcmp.eq.f32.partialorder %v853_v0, 8.507059e+37 }
0x12c6   :  { %v1829_v53 = vpop.eup %1828 }
0x12c7   :  { %v845_v54 = vmul.f32 %v1829_v53, %v843_v52  ;;  %vm850_vm15 = vweird.f32 %v1829_v53 }
0x12c8   :  { %vm851_vm4 = vmor %vm849_vm3, %vm850_vm15 }
0x12c9   :  { %v846_v56 = vsub.f32 1.0, %v845_v54 }
0x12cb   :  { %v847_v59 = vmul.f32 %v1829_v53, %v846_v56 }
0x12cd   :  { %v848_v61 = vadd.f32 %v1829_v53, %v847_v59 }
0x12cf   :  { %v852_v2 = vsel %vm851_vm4, %v1829_v53, %v848_v61 }
0x12d0   :  { %v857_v9 = vsel %vm854_vm5, %v856_v4, %v852_v2 }
0x12d1   :  { %v870_v32 = vsub.f32 1.0, %v857_v9  ;;  %v876_v37 = vmul.f32 %v857_v9, %v2295_v12 }
0x1327   :  { %v861_v8 = vpop.permute.xlu0 %860 }
0x1328   :  { %v863_v10 = vmul.f32 %v861_v8, %v857_v9 }
0x132a   :  { %865 = vrot.lane.b32.xlu0 %v863_v10, %s1930_s20 }
0x139c   :  { %v866_v14 = vpop.permute.xlu0 %865 }
0x139d   :  { %v868_v22 = vadd.f32 %v866_v14, %v837_v49 }
0x139f   :  { %1830 = vtanh.f32 %v868_v22 }
0x13a5   :  { %v1831_v23 = vpop.eup %1830 }
0x13a6   :  { %872 = vrot.lane.b32.xlu2 %v1831_v23, %s1931_s21 }
0x1400   :  { %v873_v29 = vpop.permute.xlu2 %872 }
0x1401   :  { %v875_v38 = vmul.f32 %v873_v29, %v870_v32 }
0x1403   :  { %v2352_v41 = vadd.f32 %v876_v37, %v875_v38 }
0x1405   :  { %v2356_v21 = vpack.c.bf16 %v2352_v41, %v2352_v41 }
0x1407   :  { %v880_v44 = vunpack.c.l.b16 %v2356_v21 }
0x1409   :  { %v881_v45 = vpack.c.b16 %v880_v44, %v880_v44 }
0x140b   :  { %882 = vrot.lane.b32.xlu2 %v881_v45, %s1931_s21  ;;  %v921_v49 = vrot.slane %v881_v45, 6 }
0x140d   :  { %v924_v40 = vsel %vm77_vm0, %v920_v30, %v921_v49 }
0x140e   :  { %v926_v51 = vrot.slane %v924_v40, 2 }
0x1410   :  { %1746 = vmatmul.msk.bf16.vlgmr.msra.gmra.mxu0 %vm105_vm1, %v926_v51 }
0x1411   :  { %1169 = vmatpush.bf16.msra.mxu0 %v2064_v33 }
0x1415   :  { %1170 = vmatpush.bf16.msra.mxu0 %v2070_v34 }
0x1419   :  { %1171 = vmatpush.bf16.msra.mxu0 %v2076_v35 }
0x141d   :  { %1172 = vmatpush.bf16.msra.mxu0 %v2082_v36 }
0x1465   :  { %v883_v13 = vpop.permute.xlu2 %882 }
0x1466   :  { %1745 = vmatmul.msk.bf16.vlgmr.msrb.gmra.mxu2 %vm77_vm0, %v883_v13 }
0x1467   :  { %1113 = vmatpush.bf16.msrb.mxu2 %v1968_v1 }
0x146b   :  { %1114 = vmatpush.bf16.msrb.mxu2 %v1974_v3 }
0x146f   :  { %1115 = vmatpush.bf16.msrb.mxu2 %v1980_v6 }
0x1473   :  { %1116 = vmatpush.bf16.msrb.mxu2 %v1987_v7 }
0x148d   :  { %v939_v52 = vpop.f32.mrf.mxu0 }
0x148e   :  { %v940_v33 = vadd.f32 %v939_v52, %v2004_v11 }
0x1490   :  { %v943_v34 = vsel %vm121_vm2, %v940_v33, -inf }
0x1491   :  { %944 = vmax.xlane.f32.xlu0 %v943_v34 }
0x1495   :  { %v941_v35 = vpop.f32.mrf.mxu0 }
0x14e9   :  { %v2376_v53 = vpop.f32.mrf.mxu2 }
0x14f1   :  { %v898_v36 = vpop.f32.mrf.mxu2 }
0x1504   :  { %v945_v54 = vpop.xlane.xlu0 %944 }
0x1505   :  { %v946_v56 = vsub.f32 %v940_v33, %v945_v54 }
0x1507   :  { %v947_v59 = vmul.f32 1.442695, %v946_v56 }
0x1509   :  { %1832 = vpow2.f32 %v947_v59 }
0x150f   :  { %v1833_v1 = vpop.eup %1832 }
0x1510   :  { %v949_v3 = vsel %vm121_vm2, %v1833_v1, 0.0 }
0x1511   :  { %950 = vadd.xlane.f32.xlu1 %v949_v3  ;;  %v2420_v3 = vld [vmem:[%s2760_s2] sm:$0x4] }
0x1584   :  { %v951_v6 = vpop.xlane.xlu1 %950 }
0x1585   :  { %1834 = vrcp.f32 %v951_v6 }
0x158b   :  { %v1835_v7 = vpop.eup %1834 }
0x158c   :  { %v2379_v61 = vmul.f32 %v1835_v7, %v1833_v1 }
0x158e   :  { %v954_v11 = vpack.c.bf16 %v2379_v61, %v2379_v61 }
0x1590   :  { %963 = vmatmul.bf16.vlgmr.msra.gmra.mxu1 %v954_v11 }
0x1591   :  { %1313 = vmatpush.bf16.msra.mxu1 %v2011_v16 }
0x1595   :  { %1314 = vmatpush.bf16.msra.mxu1 %v2017_v17 }
0x1599   :  { %1315 = vmatpush.bf16.msra.mxu1 %v2023_v18 }
0x159d   :  { %1316 = vmatpush.bf16.msra.mxu1 %v2029_v19 }
0x15a1   :  { %1317 = vmatpush.bf16.msra.mxu1 %v2035_v20 }
0x15a5   :  { %1318 = vmatpush.bf16.msra.mxu1 %v2042_v26 }
0x15a9   :  { %1319 = vmatpush.bf16.msra.mxu1 %v2048_v27 }
0x15ad   :  { %1320 = vmatpush.bf16.msra.mxu1 %v2054_v28 }
0x160d   :  { %v964_v63 = vpop.f32.mrf.mxu1 }
0x160e   :  { %v968_v0 = vpack.c.bf16 %v964_v63, %v964_v63 }
0x1610   :  { %v970_v2 = vunpack.c.l.b16 %v968_v0  ;;  %v2428_v0 = vld [vmem:[%s2759_s0 + $0x38] sm:$0xff] }
0x1612   :  { %v971_v4 = vpack.c.b16 %v970_v2, %v970_v2  ;;  %v2434_v2 = vld [vmem:[%s2759_s0 + $0x30] sm:$0xff] }
0x1614   :  { %v972_v8 = vrot.slane %v971_v4, 6  ;;  %v2440_v4 = vld [vmem:[%s2759_s0 + $0x28] sm:$0xff] }
0x1615   :  { %v966_v16 = vpop.f32.mrf.mxu1 }
0x1616   :  { %973 = vrot.lane.b32.xlu1 %v972_v8, %s1929_s26  ;;  %v2446_v8 = vld [vmem:[%s2759_s0 + $0x20] sm:$0xff] }
0x1688   :  { %v974_v17 = vpop.permute.xlu1 %973 }
0x1689   :  { %v976_v18 = vsel %vm77_vm0, %v920_v30, %v974_v17  ;;  %v2453_v17 = vld [vmem:[%s2759_s0 + $0x18] sm:$0xff] }
0x168a   :  { %v978_v19 = vrot.slane %v976_v18, 2  ;;  %v2459_v18 = vld [vmem:[%s2759_s0 + $0x10] sm:$0xff] }
0x168c   :  { %1747 = vmatmul.msk.bf16.vlgmr.msra.gmra.mxu2 %vm105_vm1, %v978_v19  ;;  %v2465_v19 = vld [vmem:[%s2759_s0 + $0x8] sm:$0xff] }
0x168d   :  { %1251 = vmatpush.bf16.msra.mxu2 %v2166_v24 }
0x1691   :  { %1252 = vmatpush.bf16.msra.mxu2 %v2172_v25 }
0x170f   :  { %v991_v20 = vpop.f32.mrf.mxu2 }
0x1710   :  { %v992_v26 = vadd.f32 %v991_v20, %v2136_v48  ;;  %v2471_v20 = vld [vmem:[%s2759_s0] sm:$0xff] }
0x1712   :  { %v995_v27 = vmax.f32 %v992_v26, 0.0 }
0x1714   :  { %v996_v28 = vpack.c.bf16 %v995_v27, %v995_v27  ;;  %v2477_v27 = vld [vmem:[%s2761_s1] sm:$0x1] }
0x1716   :  { %v999_v9 = vsel %vm77_vm0, %v996_v28, %v2356_v21 }
0x1717   :  { %v993_v10 = vpop.f32.mrf.mxu2  ;;  %1748 = vmatmul.msk.bf16.vlgmr.msra.gmra.mxu3 %vm105_vm1, %v999_v9 }
0x1718   :  { %1364 = vmatpush.bf16.msra.mxu3 %v2093_v42 }
0x171c   :  { %1365 = vmatpush.bf16.msra.mxu3 %v2099_v43 }
0x1720   :  { %1366 = vmatpush.bf16.msra.mxu3 %v2110_v46 }
0x1724   :  { %1367 = vmatpush.bf16.msra.mxu3 %v2117_v47 }
0x179a   :  { %v1011_v14 = vpop.f32.mrf.mxu3 }
0x179b   :  { %v1012_v22 = vadd.f32 %v1011_v14, %v2153_v55 }
0x179d   :  { %1035 = vrot.lane.b32.xlu2 %v1012_v22, %s1929_s26  ;;  %v1749_v23 = vmul.f32 -1.442695, %v1012_v22 }
0x179f   :  { %1836 = vpow2.f32 %v1749_v23 }
0x17a2   :  { %v1013_v48 = vpop.f32.mrf.mxu3 }
0x17a5   :  { %v1837_v32 = vpop.eup %1836 }
0x17a6   :  { %v1018_v29 = vadd.f32 1.0, %v1837_v32 }
0x17a8   :  { %1838 = vrcp.f32 %v1018_v29  ;;  %v1030_v46 = vand.u32 2147483648, %v1018_v29  ;;  %vm1024_vm7 = vweird.f32 %v1018_v29  ;;  %v1028_v47 = vand.u32 2147483647, %v1018_v29 }
0x17aa   :  { %v1031_v55 = vor.u32 1.1754944e-38, %v1030_v46  ;;  %vm1029_vm9 = vcmp.eq.f32.partialorder %v1028_v47, 8.507059e+37  ;;  %v1913_v46 = vld [vmem:[%s2762_s4 + $0x38] sm:$0xff]  ;;  %v1914_v47 = vld [vmem:[%s2762_s4 + $0x30] sm:$0xff] }
0x17ae   :  { %v1839_v37 = vpop.eup %1838 }
0x17af   :  { %v1020_v38 = vmul.f32 %v1839_v37, %v1018_v29  ;;  %vm1025_vm6 = vweird.f32 %v1839_v37 }
0x17b0   :  { %vm1026_vm8 = vmor %vm1024_vm7, %vm1025_vm6 }
0x17b1   :  { %v1021_v42 = vsub.f32 1.0, %v1020_v38 }
0x17b3   :  { %v1022_v21 = vmul.f32 %v1839_v37, %v1021_v42 }
0x17b5   :  { %v1023_v43 = vadd.f32 %v1839_v37, %v1022_v21 }
0x17b7   :  { %v1027_v44 = vsel %vm1026_vm8, %v1839_v37, %v1023_v43 }
0x17b8   :  { %v1032_v30 = vsel %vm1029_vm9, %v1031_v55, %v1027_v44  ;;  %v1915_v44 = vld [vmem:[%s2762_s4 + $0x28] sm:$0xff]  ;;  %v1916_v55 = vld [vmem:[%s2762_s4 + $0x20] sm:$0xff]  ;;  %vm380_vm9 = vcmask 588800  }
0x17b9   :  { %v1045_v52 = vsub.f32 1.0, %v1032_v30  ;;  %v1051_v34 = vmul.f32 %v1032_v30, %v2352_v41 }
0x17f7   :  { %v1036_v45 = vpop.permute.xlu2 %1035 }
0x17f8   :  { %v1038_v49 = vmul.f32 %v1036_v45, %v1032_v30  ;;  %v1917_v45 = vld [vmem:[%s2762_s4 + $0x18] sm:$0xff]  ;;  %v1918_v30 = vld [vmem:[%s2762_s4 + $0x10] sm:$0xff] }
0x17fa   :  { %1040 = vrot.lane.b32.xlu2 %v1038_v49, %s1930_s20  ;;  %v1919_v49 = vld [vmem:[%s2762_s4 + $0x8] sm:$0xff] }
0x1854   :  { %v1041_v40 = vpop.permute.xlu2 %1040 }
0x1855   :  { %v1043_v51 = vadd.f32 %v1041_v40, %v1012_v22  ;;  %v1920_v40 = vld [vmem:[%s2762_s4] sm:$0xff] }
0x1857   :  { %1840 = vtanh.f32 %v1043_v51 }
0x185d   :  { %v1841_v13 = vpop.eup %1840 }
0x185e   :  { %1047 = vrot.lane.b32.xlu2 %v1841_v13, %s1931_s21 }
0x18b8   :  { %v1048_v33 = vpop.permute.xlu2 %1047 }
0x18b9   :  { %v1050_v35 = vmul.f32 %v1048_v33, %v1045_v52 }
0x18bb   :  { %v2409_v36 = vadd.f32 %v1051_v34, %v1050_v35 }
0x18bd   :  { %v2413_v54 = vpack.c.bf16 %v2409_v36, %v2409_v36 }
0x18bf   :  { %v1055_v56 = vunpack.c.l.b16 %v2413_v54 }
0x18c1   :  { %v1056_v59 = vpack.c.b16 %v1055_v56, %v1055_v56 }
0x18c3   :  { %1057 = vrot.lane.b32.xlu0 %v1056_v59, %s1931_s21  ;;  %v1097_v1 = vshll.u32 %v1056_v59, 16 }
0x18c5   :  { %v1099_v6 = vrot.slane %v1097_v1, 6 }
0x18c7   :  { %v1102_v7 = vsel %vm77_vm0, %v2420_v3, %v1099_v6 }
0x18c8   :  { %v1103_v11 = vshrl.u32 %v1102_v7, 16 }
0x18ca   :  { %v1105_v63 = vrot.slane %v1103_v11, 2 }
0x18cc   :  { %1751 = vmatmul.msk.bf16.vlgmr.msrb.gmra.mxu2 %vm105_vm1, %v1105_v63  ;;  %v2521_v63 = vld [vmem:[%s2761_s1 + $0x1] sm:$0x1] }
0x18cd   :  { %1344 = vmatpush.bf16.msrb.mxu2 %v2428_v0 }
0x18d1   :  { %1345 = vmatpush.bf16.msrb.mxu2 %v2434_v2 }
0x18d5   :  { %1346 = vmatpush.bf16.msrb.mxu2 %v2440_v4 }
0x18d9   :  { %1347 = vmatpush.bf16.msrb.mxu2 %v2446_v8 }
0x1935   :  { %v1058_v16 = vpop.permute.xlu0 %1057 }
0x1936   :  { %1750 = vmatmul.msk.bf16.vlgmr.msrb.gmra.mxu0 %vm77_vm0, %v1058_v16 }
0x1937   :  { %1292 = vmatpush.bf16.msrb.mxu0 %v2453_v17 }
0x193b   :  { %1293 = vmatpush.bf16.msrb.mxu0 %v2459_v18 }
0x193f   :  { %1294 = vmatpush.bf16.msrb.mxu0 %v2465_v19 }
0x1943   :  { %1295 = vmatpush.bf16.msrb.mxu0 %v2471_v20 }
0x194f   :  { %v1118_v26 = vpop.f32.mrf.mxu2 }
0x1950   :  { %v1119_v28 = vadd.f32 %v2477_v27, %v1118_v26 }
0x1952   :  { %v1122_v9 = vsel %vm121_vm2, %v1119_v28, -inf }
0x1953   :  { %1123 = vmax.xlane.f32.xlu1 %v1122_v9 }
0x1957   :  { %v1120_v10 = vpop.f32.mrf.mxu2 }
0x1958   :  { %v1924_v10 = vld [vmem:[%s2759_s0 + $0x48] sm:$0xff] }
0x19b3   :  { %v2481_v14 = vpop.f32.mrf.mxu0 }
0x19bb   :  { %v1073_v22 = vpop.f32.mrf.mxu0 }
0x19c6   :  { %v1124_v48 = vpop.xlane.xlu1 %1123 }
0x19c7   :  { %v1125_v23 = vsub.f32 %v1119_v28, %v1124_v48  ;;  %v2542_v48 = vld [vmem:[%s2761_s1 + $0x2] sm:$0x1] }
0x19c9   :  { %v1126_v32 = vmul.f32 1.442695, %v1125_v23 }
0x19cb   :  { %1842 = vpow2.f32 %v1126_v32 }
0x19d1   :  { %v1843_v29 = vpop.eup %1842 }
0x19d2   :  { %v1128_v37 = vsel %vm121_vm2, %v1843_v29, 0.0 }
0x19d3   :  { %1129 = vadd.xlane.f32.xlu2 %v1128_v37 }
0x1a46   :  { %v1130_v38 = vpop.xlane.xlu2 %1129 }
0x1a47   :  { %1844 = vrcp.f32 %v1130_v38 }
0x1a4d   :  { %v1845_v42 = vpop.eup %1844 }
0x1a4e   :  { %v2484_v21 = vmul.f32 %v1845_v42, %v1843_v29 }
0x1a50   :  { %v1133_v43 = vpack.c.bf16 %v2484_v21, %v2484_v21 }
0x1a52   :  { %1142 = vmatmul.bf16.vlgmr.msrb.gmra.mxu3 %v1133_v43 }
0x1a53   :  { %1492 = vmatpush.bf16.msrb.mxu3 %v1913_v46 }
0x1a57   :  { %1493 = vmatpush.bf16.msrb.mxu3 %v1914_v47 }
0x1a5b   :  { %1494 = vmatpush.bf16.msrb.mxu3 %v1915_v44 }
0x1a5f   :  { %1495 = vmatpush.bf16.msrb.mxu3 %v1916_v55 }
0x1a63   :  { %1496 = vmatpush.bf16.msrb.mxu3 %v1917_v45 }
0x1a67   :  { %1497 = vmatpush.bf16.msrb.mxu3 %v1918_v30 }
0x1a6b   :  { %1498 = vmatpush.bf16.msrb.mxu3 %v1919_v49 }
0x1a6f   :  { %1499 = vmatpush.bf16.msrb.mxu3 %v1920_v40 }
0x1ad5   :  { %v1143_v51 = vpop.f32.mrf.mxu3 }
0x1ad6   :  { %v1147_v13 = vpack.c.bf16 %v1143_v51, %v1143_v51 }
0x1ad8   :  { %v1149_v52 = vunpack.c.l.b16 %v1147_v13 }
0x1ada   :  { %v1150_v33 = vpack.c.b16 %v1149_v52, %v1149_v52 }
0x1adc   :  { %v1152_v34 = vshll.u32 %v1150_v33, 16 }
0x1add   :  { %v1145_v35 = vpop.f32.mrf.mxu3 }
0x1ade   :  { %v1154_v56 = vrot.slane %v1152_v34, 6 }
0x1ae0   :  { %1155 = vrot.lane.b32.xlu0 %v1154_v56, %s1929_s26 }
0x1b52   :  { %v1156_v59 = vpop.permute.xlu0 %1155 }
0x1b53   :  { %v1158_v1 = vsel %vm77_vm0, %v2420_v3, %v1156_v59 }
0x1b54   :  { %v1159_v6 = vshrl.u32 %v1158_v1, 16 }
0x1b56   :  { %v1161_v7 = vrot.slane %v1159_v6, 2 }
0x1b58   :  { %1752 = vmatmul.msk.bf16.vlgmr.msra.gmra.mxu0 %vm105_vm1, %v1161_v7 }
0x1b59   :  { %1426 = vmatpush.bf16.msra.mxu0 %v2166_v24  ;;  %v1922_v24 = vld [vmem:[%s2759_s0 + $0x58] sm:$0xff] }
0x1b5d   :  { %1427 = vmatpush.bf16.msra.mxu0 %v2172_v25  ;;  %v1923_v25 = vld [vmem:[%s2759_s0 + $0x50] sm:$0xff] }
0x1bd5   :  { %v1174_v11 = vpop.f32.mrf.mxu0 }
0x1bd6   :  { %v1175_v16 = vadd.f32 %v2521_v63, %v1174_v11 }
0x1bd8   :  { %v1178_v26 = vmax.f32 %v1175_v16, 0.0 }
0x1bda   :  { %v1179_v28 = vpack.c.bf16 %v1178_v26, %v1178_v26  ;;  %v1278_v26 = vld [vmem:[%s2760_s2] sm:$0x8] }
0x1bdc   :  { %v1182_v3 = vsel %vm77_vm0, %v1179_v28, %v2413_v54  ;;  %v1925_v54 = vld [vmem:[%s2759_s0 + $0x40] sm:$0xff] }
0x1bdd   :  { %v1176_v9 = vpop.f32.mrf.mxu0  ;;  %1753 = vmatmul.msk.bf16.vlgmr.msrb.gmra.mxu1 %vm105_vm1, %v1182_v3 }
0x1bde   :  { %1547 = vmatpush.bf16.msrb.mxu1 %v1922_v24 }
0x1be2   :  { %1548 = vmatpush.bf16.msrb.mxu1 %v1923_v25 }
0x1be6   :  { %1549 = vmatpush.bf16.msrb.mxu1 %v1924_v10 }
0x1bea   :  { %1550 = vmatpush.bf16.msrb.mxu1 %v1925_v54 }
0x1c5a   :  { %v1194_v22 = vpop.f32.mrf.mxu1 }
0x1c5b   :  { %v1195_v23 = vadd.f32 %v2542_v48, %v1194_v22 }
0x1c5d   :  { %1218 = vrot.lane.b32.xlu0 %v1195_v23, %s1929_s26  ;;  %v1754_v29 = vmul.f32 -1.442695, %v1195_v23 }
0x1c5f   :  { %1846 = vpow2.f32 %v1754_v29 }
0x1c62   :  { %v1196_v32 = vpop.f32.mrf.mxu1 }
0x1c65   :  { %v1847_v37 = vpop.eup %1846 }
0x1c66   :  { %v1201_v38 = vadd.f32 1.0, %v1847_v37 }
0x1c68   :  { %1848 = vrcp.f32 %v1201_v38  ;;  %v1213_v55 = vand.u32 2147483648, %v1201_v38  ;;  %vm1207_vm11 = vweird.f32 %v1201_v38  ;;  %v1211_v45 = vand.u32 2147483647, %v1201_v38 }
0x1c6a   :  { %v1214_v49 = vor.u32 1.1754944e-38, %v1213_v55  ;;  %vm1212_vm13 = vcmp.eq.f32.partialorder %v1211_v45, 8.507059e+37 }
0x1c6e   :  { %v1849_v42 = vpop.eup %1848 }
0x1c6f   :  { %v1203_v43 = vmul.f32 %v1849_v42, %v1201_v38  ;;  %vm1208_vm10 = vweird.f32 %v1849_v42 }
0x1c70   :  { %vm1209_vm12 = vmor %vm1207_vm11, %vm1208_vm10 }
0x1c71   :  { %v1204_v46 = vsub.f32 1.0, %v1203_v43 }
0x1c73   :  { %v1205_v47 = vmul.f32 %v1849_v42, %v1204_v46 }
0x1c75   :  { %v1206_v44 = vadd.f32 %v1849_v42, %v1205_v47 }
0x1c77   :  { %v1210_v30 = vsel %vm1209_vm12, %v1849_v42, %v1206_v44 }
0x1c78   :  { %v1215_v51 = vsel %vm1212_vm13, %v1214_v49, %v1210_v30  ;;  %v1927_v30 = vld [vmem:[%s2759_s0 + $0x68] sm:$0xff]  ;;  %v1928_v49 = vld [vmem:[%s2759_s0 + $0x60] sm:$0xff] }
0x1c79   :  { %v1228_v35 = vsub.f32 1.0, %v1215_v51  ;;  %v1234_v59 = vmul.f32 %v1215_v51, %v2409_v36 }
0x1ccf   :  { %v1219_v40 = vpop.permute.xlu0 %1218 }
0x1cd0   :  { %v1221_v13 = vmul.f32 %v1219_v40, %v1215_v51 }
0x1cd2   :  { %1223 = vrot.lane.b32.xlu1 %v1221_v13, %s1930_s20 }
0x1d44   :  { %v1224_v52 = vpop.permute.xlu1 %1223 }
0x1d45   :  { %v1226_v33 = vadd.f32 %v1224_v52, %v1195_v23 }
0x1d47   :  { %1850 = vtanh.f32 %v1226_v33 }
0x1d4d   :  { %v1851_v34 = vpop.eup %1850 }
0x1d4e   :  { %1230 = vrot.lane.b32.xlu0 %v1851_v34, %s1931_s21 }
0x1dc0   :  { %v1231_v56 = vpop.permute.xlu0 %1230 }
0x1dc1   :  { %v1233_v1 = vmul.f32 %v1231_v56, %v1228_v35 }
0x1dc3   :  { %v2549_v6 = vadd.f32 %v1234_v59, %v1233_v1 }
0x1dc5   :  { %v1236_v7 = vpack.c.bf16 %v2549_v6, %v2549_v6 }
0x1dc7   :  { %v1238_v11 = vunpack.c.l.b16 %v1236_v7 }
0x1dc9   :  { %v1239_v16 = vpack.c.b16 %v1238_v11, %v1238_v11 }
0x1dcb   :  { %v1279_v28 = vrot.slane %v1239_v16, 5 }
0x1dcd   :  { %v1282_v3 = vsel %vm77_vm0, %v1278_v26, %v1279_v28 }
0x1dce   :  { %v1284_v9 = vrot.slane %v1282_v3, 3 }
0x1dd0   :  { %1756 = vmatmul.msk.bf16.vlgmr.msrb.gmra.mxu0 %vm105_vm1, %v1284_v9 }
0x1dd1   :  { %1527 = vmatpush.bf16.msrb.mxu0 %v2428_v0 }
0x1dd5   :  { %1528 = vmatpush.bf16.msrb.mxu0 %v2434_v2 }
0x1dd9   :  { %1529 = vmatpush.bf16.msrb.mxu0 %v2440_v4 }
0x1ddd   :  { %1530 = vmatpush.bf16.msrb.mxu0 %v2446_v8 }
0x1e4d   :  { %v1297_v24 = vpop.f32.mrf.mxu0 }
0x1e4e   :  { %v1298_v25 = vadd.f32 %v2477_v27, %v1297_v24 }
0x1e50   :  { %v1301_v10 = vsel %vm121_vm2, %v1298_v25, -inf }
0x1e51   :  { %1302 = vmax.xlane.f32.xlu2 %v1301_v10 }
0x1e55   :  { %v1299_v54 = vpop.f32.mrf.mxu0 }
0x1e69   :  { %1240 = vrot.lane.b32.xlu2 %v1239_v16, %s1931_s21 }
0x1ec4   :  { %v1303_v22 = vpop.xlane.xlu2 %1302 }
0x1ec5   :  { %v1304_v23 = vsub.f32 %v1298_v25, %v1303_v22 }
0x1ec7   :  { %v1305_v32 = vmul.f32 1.442695, %v1304_v23 }
0x1ec9   :  { %1852 = vpow2.f32 %v1305_v32 }
0x1ecc   :  { %v1241_v0 = vpop.permute.xlu2 %1240 }
0x1ecd   :  { %1755 = vmatmul.msk.bf16.vlgmr.msra.gmra.mxu2 %vm77_vm0, %v1241_v0 }
0x1ece   :  { %1471 = vmatpush.bf16.msra.mxu2 %v2453_v17 }
0x1ecf   :  { %v1853_v2 = vpop.eup %1852 }
0x1ed0   :  { %v1307_v4 = vsel %vm121_vm2, %v1853_v2, 0.0 }
0x1ed1   :  { %1308 = vadd.xlane.f32.xlu0 %v1307_v4 }
0x1ed2   :  { %1472 = vmatpush.bf16.msra.mxu2 %v2459_v18 }
0x1ed6   :  { %1473 = vmatpush.bf16.msra.mxu2 %v2465_v19 }
0x1eda   :  { %1474 = vmatpush.bf16.msra.mxu2 %v2471_v20 }
0x1f44   :  { %v1309_v8 = vpop.xlane.xlu0 %1308 }
0x1f45   :  { %1854 = vrcp.f32 %v1309_v8 }
0x1f4b   :  { %v1855_v29 = vpop.eup %1854 }
0x1f4c   :  { %v2571_v37 = vmul.f32 %v1855_v29, %v1853_v2 }
0x1f4e   :  { %v1312_v38 = vpack.c.bf16 %v2571_v37, %v2571_v37 }
0x1f50   :  { %v2575_v42 = vpop.f32.mrf.mxu2  ;;  %1321 = vmatmul.bf16.vlgmr.msra.gmra.mxu1 %v1312_v38 }
0x1f58   :  { %v1256_v17 = vpop.f32.mrf.mxu2 }
0x1fcd   :  { %v1322_v43 = vpop.f32.mrf.mxu1 }
0x1fce   :  { %v1326_v46 = vpack.c.bf16 %v1322_v43, %v1322_v43 }
0x1fd0   :  { %v1328_v47 = vunpack.c.l.b16 %v1326_v46 }
0x1fd2   :  { %v1329_v18 = vpack.c.b16 %v1328_v47, %v1328_v47 }
0x1fd4   :  { %v1330_v44 = vrot.slane %v1329_v18, 5 }
0x1fd5   :  { %v1324_v19 = vpop.f32.mrf.mxu1 }
0x1fd6   :  { %1331 = vrot.lane.b32.xlu1 %v1330_v44, %s1929_s26  ;;  %v1453_v19 = vld [vmem:[%s2760_s2] sm:$0x8] }
0x2048   :  { %v1332_v20 = vpop.permute.xlu1 %1331 }
0x2049   :  { %v1334_v55 = vsel %vm77_vm0, %v1278_v26, %v1332_v20 }
0x204a   :  { %v1336_v45 = vrot.slane %v1334_v55, 3 }
0x204c   :  { %1757 = vmatmul.msk.bf16.vlgmr.msrb.gmra.mxu2 %vm105_vm1, %v1336_v45 }
0x204d   :  { %1607 = vmatpush.bf16.msrb.mxu2 %v1927_v30 }
0x2051   :  { %1608 = vmatpush.bf16.msrb.mxu2 %v1928_v49 }
0x20cf   :  { %v1349_v40 = vpop.f32.mrf.mxu2 }
0x20d0   :  { %v1350_v51 = vadd.f32 %v2521_v63, %v1349_v40 }
0x20d2   :  { %v1353_v13 = vmax.f32 %v1350_v51, 0.0 }
0x20d4   :  { %v1354_v52 = vpack.c.bf16 %v1353_v13, %v1353_v13 }
0x20d6   :  { %v1357_v33 = vsel %vm77_vm0, %v1354_v52, %v1236_v7 }
0x20d7   :  { %v1351_v34 = vpop.f32.mrf.mxu2  ;;  %1758 = vmatmul.msk.bf16.vlgmr.msra.gmra.mxu3 %vm105_vm1, %v1357_v33 }
0x215a   :  { %v1369_v35 = vpop.f32.mrf.mxu3 }
0x215b   :  { %v1370_v56 = vadd.f32 %v2542_v48, %v1369_v35 }
0x215d   :  { %1393 = vrot.lane.b32.xlu1 %v1370_v56, %s1929_s26  ;;  %v1759_v1 = vmul.f32 -1.442695, %v1370_v56 }
0x215f   :  { %1856 = vpow2.f32 %v1759_v1 }
0x2162   :  { %v1371_v59 = vpop.f32.mrf.mxu3 }
0x2165   :  { %v1857_v11 = vpop.eup %1856 }
0x2166   :  { %v1376_v16 = vadd.f32 1.0, %v1857_v11 }
0x2168   :  { %1858 = vrcp.f32 %v1376_v16  ;;  %v1388_v7 = vand.u32 2147483648, %v1376_v16  ;;  %vm1382_vm15 = vweird.f32 %v1376_v16  ;;  %v1386_v25 = vand.u32 2147483647, %v1376_v16 }
0x216a   :  { %v1389_v54 = vor.u32 1.1754944e-38, %v1388_v7  ;;  %vm1387_vm4 = vcmp.eq.f32.partialorder %v1386_v25, 8.507059e+37 }
0x216e   :  { %v1859_v26 = vpop.eup %1858 }
0x216f   :  { %v1378_v28 = vmul.f32 %v1859_v26, %v1376_v16  ;;  %vm1383_vm14 = vweird.f32 %v1859_v26 }
0x2170   :  { %vm1384_vm3 = vmor %vm1382_vm15, %vm1383_vm14 }
0x2171   :  { %v1379_v3 = vsub.f32 1.0, %v1378_v28 }
0x2173   :  { %v1380_v9 = vmul.f32 %v1859_v26, %v1379_v3 }
0x2175   :  { %v1381_v24 = vadd.f32 %v1859_v26, %v1380_v9 }
0x2177   :  { %v1385_v10 = vsel %vm1384_vm3, %v1859_v26, %v1381_v24 }
0x2178   :  { %v1390_v23 = vsel %vm1387_vm4, %v1389_v54, %v1385_v10 }
0x2179   :  { %v1403_v8 = vsub.f32 1.0, %v1390_v23  ;;  %v1409_v38 = vmul.f32 %v1390_v23, %v2549_v6 }
0x21cf   :  { %v1394_v22 = vpop.permute.xlu1 %1393 }
0x21d0   :  { %v1396_v32 = vmul.f32 %v1394_v22, %v1390_v23 }
0x21d2   :  { %1398 = vrot.lane.b32.xlu2 %v1396_v32, %s1930_s20 }
0x222c   :  { %v1399_v0 = vpop.permute.xlu2 %1398 }
0x222d   :  { %v1401_v2 = vadd.f32 %v1399_v0, %v1370_v56 }
0x222f   :  { %1860 = vtanh.f32 %v1401_v2 }
0x2235   :  { %v1861_v4 = vpop.eup %1860 }
0x2236   :  { %1405 = vrot.lane.b32.xlu1 %v1861_v4, %s1931_s21 }
0x22a8   :  { %v1406_v29 = vpop.permute.xlu1 %1405 }
0x22a9   :  { %v1408_v17 = vmul.f32 %v1406_v29, %v1403_v8 }
0x22ab   :  { %v2594_v43 = vadd.f32 %v1409_v38, %v1408_v17 }
0x22ad   :  { %v1411_v46 = vpack.c.bf16 %v2594_v43, %v2594_v43 }
0x22af   :  { %v1413_v47 = vunpack.c.l.b16 %v1411_v46 }
0x22b1   :  { %v1414_v18 = vpack.c.b16 %v1413_v47, %v1413_v47 }
0x22b3   :  { %1415 = vrot.lane.b32.xlu0 %v1414_v18, %s1931_s21  ;;  %v1455_v44 = vshll.u32 %v1414_v18, 16 }
0x22b5   :  { %v1457_v20 = vrot.slane %v1455_v44, 5 }
0x22b7   :  { %v1460_v55 = vsel %vm77_vm0, %v1453_v19, %v1457_v20 }
0x22b8   :  { %v1461_v45 = vshrl.u32 %v1460_v55, 16 }
0x22ba   :  { %v1463_v30 = vrot.slane %v1461_v45, 3 }
0x22bc   :  { %1761 = vmatmul.msk.bf16.vlgmr.msra.gmra.mxu2 %vm105_vm1, %v1463_v30 }
0x2325   :  { %v1416_v49 = vpop.permute.xlu0 %1415 }
0x2326   :  { %1760 = vmatmul.msk.bf16.vlgmr.msra.gmra.mxu0 %vm77_vm0, %v1416_v49 }
0x233f   :  { %v1476_v40 = vpop.f32.mrf.mxu2 }
0x2340   :  { %v1477_v51 = vadd.f32 %v2477_v27, %v1476_v40 }
0x2342   :  { %v1480_v13 = vsel %vm121_vm2, %v1477_v51, -inf }
0x2343   :  { %1481 = vmax.xlane.f32.xlu2 %v1480_v13 }
0x2347   :  { %v1478_v52 = vpop.f32.mrf.mxu2 }
0x23a3   :  { %v2607_v33 = vpop.f32.mrf.mxu0 }
0x23ab   :  { %v1431_v34 = vpop.f32.mrf.mxu0 }
0x23b6   :  { %v1482_v35 = vpop.xlane.xlu2 %1481 }
0x23b7   :  { %v1483_v56 = vsub.f32 %v1477_v51, %v1482_v35 }
0x23b9   :  { %v1484_v59 = vmul.f32 1.442695, %v1483_v56 }
0x23bb   :  { %1862 = vpow2.f32 %v1484_v59 }
0x23c1   :  { %v1863_v1 = vpop.eup %1862 }
0x23c2   :  { %v1486_v11 = vsel %vm121_vm2, %v1863_v1, 0.0 }
0x23c3   :  { %1487 = vadd.xlane.f32.xlu1 %v1486_v11  ;;  %v2627_v11 = vld [vmem:[%s2761_s1 + $0x3] sm:$0x1] }
0x2436   :  { %v1488_v16 = vpop.xlane.xlu1 %1487 }
0x2437   :  { %1864 = vrcp.f32 %v1488_v16  ;;  %v359_v16 = vadd.f32 %v2205_v58, %v2627_v11 }
0x243d   :  { %v1865_v26 = vpop.eup %1864 }
0x243e   :  { %v2610_v28 = vmul.f32 %v1865_v26, %v1863_v1  ;;  %v362_v26 = vsel %vm121_vm2, %v359_v16, -inf }
0x2440   :  { %v1491_v27 = vpack.c.bf16 %v2610_v28, %v2610_v28 }
0x2442   :  { %1500 = vmatmul.bf16.vlgmr.msrb.gmra.mxu3 %v1491_v27 }
0x24c5   :  { %v1501_v3 = vpop.f32.mrf.mxu3 }
0x24c6   :  { %v1505_v9 = vpack.c.bf16 %v1501_v3, %v1501_v3 }
0x24c8   :  { %v1507_v24 = vunpack.c.l.b16 %v1505_v9 }
0x24ca   :  { %v1508_v7 = vpack.c.b16 %v1507_v24, %v1507_v24 }
0x24cc   :  { %v1510_v25 = vshll.u32 %v1508_v7, 16 }
0x24cd   :  { %v1503_v10 = vpop.f32.mrf.mxu3 }
0x24ce   :  { %v1512_v54 = vrot.slane %v1510_v25, 5 }
0x24d0   :  { %1513 = vrot.lane.b32.xlu0 %v1512_v54, %s1929_s26 }
0x2542   :  { %v1514_v22 = vpop.permute.xlu0 %1513 }
0x2543   :  { %v1516_v23 = vsel %vm77_vm0, %v1453_v19, %v1514_v22  ;;  %v539_v22 = vadd.f32 %v2262_v50, %v2627_v11  ;;  %v2652_v50 = vadd.f32 %v2575_v42, %v2627_v11 }
0x2544   :  { %v1517_v32 = vshrl.u32 %v1516_v23, 16 }
0x2546   :  { %v1519_v0 = vrot.slane %v1517_v32, 3 }
0x2548   :  { %1762 = vmatmul.msk.bf16.vlgmr.msrb.gmra.mxu0 %vm105_vm1, %v1519_v0  ;;  %v542_v0 = vsel %vm121_vm2, %v539_v22, -inf }
0x25c5   :  { %v1532_v2 = vpop.f32.mrf.mxu0 }
0x25c6   :  { %v1533_v4 = vadd.f32 %v2521_v63, %v1532_v2  ;;  %v714_v2 = vadd.f32 %v2332_v62, %v2627_v11  ;;  %v1430_v62 = vadd.f32 %v2607_v33, %v2627_v11 }
0x25c8   :  { %v1536_v8 = vmax.f32 %v1533_v4, 0.0  ;;  %v717_v4 = vsel %vm121_vm2, %v714_v2, -inf }
0x25ca   :  { %v1537_v29 = vpack.c.bf16 %v1536_v8, %v1536_v8 }
0x25cc   :  { %v1540_v38 = vsel %vm77_vm0, %v1537_v29, %v1411_v46  ;;  %v1258_v29 = vsel %vm121_vm2, %v2652_v50, -inf }
0x25cd   :  { %v1534_v17 = vpop.f32.mrf.mxu0  ;;  %1763 = vmatmul.msk.bf16.vlgmr.msrb.gmra.mxu1 %vm105_vm1, %v1540_v38  ;;  %v1433_v38 = vsel %vm121_vm2, %v1430_v62, -inf }
0x264a   :  { %v1552_v47 = vpop.f32.mrf.mxu1 }
0x264b   :  { %v1553_v18 = vadd.f32 %v2542_v48, %v1552_v47 }
0x264d   :  { %1576 = vrot.lane.b32.xlu0 %v1553_v18, %s1929_s26  ;;  %v1764_v19 = vmul.f32 -1.442695, %v1553_v18 }
0x264f   :  { %1866 = vpow2.f32 %v1764_v19 }
0x2652   :  { %v1554_v44 = vpop.f32.mrf.mxu1 }
0x2655   :  { %v1867_v20 = vpop.eup %1866 }
0x2656   :  { %v1559_v55 = vadd.f32 1.0, %v1867_v20 }
0x2658   :  { %1868 = vrcp.f32 %v1559_v55  ;;  %v1571_v46 = vand.u32 2147483648, %v1559_v55  ;;  %vm1565_vm6 = vweird.f32 %v1559_v55  ;;  %v1569_v51 = vand.u32 2147483647, %v1559_v55 }
0x265a   :  { %v1572_v48 = vor.u32 1.1754944e-38, %v1571_v46  ;;  %vm1570_vm8 = vcmp.eq.f32.partialorder %v1569_v51, 8.507059e+37 }
0x265e   :  { %v1869_v45 = vpop.eup %1868 }
0x265f   :  { %v1561_v63 = vmul.f32 %v1869_v45, %v1559_v55  ;;  %vm1566_vm5 = vweird.f32 %v1869_v45 }
0x2660   :  { %vm1567_vm7 = vmor %vm1565_vm6, %vm1566_vm5 }
0x2661   :  { %v1562_v30 = vsub.f32 1.0, %v1561_v63 }
0x2663   :  { %v1563_v49 = vmul.f32 %v1869_v45, %v1562_v30 }
0x2665   :  { %v1564_v40 = vadd.f32 %v1869_v45, %v1563_v49 }
0x2667   :  { %v1568_v13 = vsel %vm1567_vm7, %v1869_v45, %v1564_v40 }
0x2668   :  { %v1573_v34 = vsel %vm1570_vm8, %v1572_v48, %v1568_v13 }
0x2669   :  { %v1586_v27 = vsub.f32 1.0, %v1573_v34  ;;  %v1592_v9 = vmul.f32 %v1573_v34, %v2594_v43 }
0x26bf   :  { %v1577_v52 = vpop.permute.xlu0 %1576 }
0x26c0   :  { %v1579_v35 = vmul.f32 %v1577_v52, %v1573_v34 }
0x26c2   :  { %1581 = vrot.lane.b32.xlu2 %v1579_v35, %s1930_s20 }
0x271c   :  { %v1582_v56 = vpop.permute.xlu2 %1581 }
0x271d   :  { %v1584_v59 = vadd.f32 %v1582_v56, %v1553_v18  ;;  %v897_v56 = vadd.f32 %v2376_v53, %v2627_v11 }
0x271f   :  { %1870 = vtanh.f32 %v1584_v59 }
0x2725   :  { %v1871_v1 = vpop.eup %1870 }
0x2726   :  { %1588 = vrot.lane.b32.xlu0 %v1871_v1, %s1931_s21  ;;  %v900_v1 = vsel %vm121_vm2, %v897_v56, -inf }
0x2750   :  { %363 = vmax.xlane.f32.xlu0 %v362_v26 }
0x2798   :  { %v1589_v3 = vpop.permute.xlu0 %1588 }
0x2799   :  { %v1591_v24 = vmul.f32 %v1589_v3, %v1586_v27 }
0x279b   :  { %v2633_v7 = vadd.f32 %v1592_v9, %v1591_v24 }
0x279d   :  { %v1594_v25 = vpack.c.bf16 %v2633_v7, %v2633_v7 }
0x279f   :  { %1596 = vrot.lane.b32.xlu1 %v1594_v25, %s1931_s21 }
0x27a7   :  { %375 = vrot.lane.b32.xlu1 %v2057_v31, %s1930_s20  ;;  %v1072_v31 = vadd.f32 %v2481_v14, %v2627_v11 }
0x27a9   :  { %v1075_v8 = vsel %vm121_vm2, %v1072_v31, -inf }
0x27c3   :  { %v364_v10 = vpop.xlane.xlu0 %363 }
0x27c4   :  { %v365_v58 = vsub.f32 %v359_v16, %v364_v10 }
0x27c6   :  { %v366_v54 = vmul.f32 1.442695, %v365_v58 }
0x27c8   :  { %1872 = vpow2.f32 %v366_v54 }
0x27ce   :  { %v1873_v23 = vpop.eup %1872 }
0x27cf   :  { %v368_v32 = vsel %vm121_vm2, %v1873_v23, 0.0 }
0x27d0   :  { %369 = vadd.xlane.f32.xlu2 %v368_v32 }
0x27d1   :  { %543 = vmax.xlane.f32.xlu1 %v542_v0 }
0x27d8   :  { %718 = vmax.xlane.f32.xlu2 %v717_v4 }
0x27d9   :  { %1076 = vmax.xlane.f32.xlu1 %v1075_v8 }
0x27e1   :  { %1259 = vmax.xlane.f32.xlu1 %v1258_v29 }
0x27e9   :  { %1434 = vmax.xlane.f32.xlu1 %v1433_v38 }
0x2811   :  { %v1597_v14 = vpop.permute.xlu1 %1596 }
0x2812   :  { %1765 = vmatmul.msk.bf16.vlgmr.msrb.gmra.mxu2 %vm77_vm0, %v1597_v14 }
0x2819   :  { %v376_v17 = vpop.permute.xlu1 %375 }
0x2843   :  { %v370_v47 = vpop.xlane.xlu2 %369 }
0x2844   :  { %1874 = vlog2.f32 %v370_v47  ;;  %v544_v18 = vpop.xlane.xlu1 %543 }
0x2845   :  { %v2660_v44 = vsub.f32 %v539_v22, %v544_v18 }
0x2847   :  { %v546_v42 = vmul.f32 1.442695, %v2660_v44 }
0x2849   :  { %1876 = vpow2.f32 %v546_v42 }
0x284a   :  { %v1875_v19 = vpop.eup %1874 }
0x284b   :  { %v372_v20 = vmul.f32 0.6931472, %v1875_v19  ;;  %v719_v55 = vpop.xlane.xlu2 %718 }
0x284c   :  { %v720_v45 = vsub.f32 %v714_v2, %v719_v55 }
0x284d   :  { %v373_v33 = vsub.f32 %v365_v58, %v372_v20 }
0x284e   :  { %v721_v63 = vmul.f32 1.442695, %v720_v45 }
0x284f   :  { %v1877_v30 = vpop.eup %1876  ;;  %v378_v49 = vsel %vm77_vm0, %v373_v33, %v2180_v39  ;;  %v1077_v39 = vpop.xlane.xlu1 %1076 }
0x2850   :  { %v379_v40 = vsel %vm105_vm1, %v378_v49, %v376_v17  ;;  %1878 = vpow2.f32 %v721_v63  ;;  %v548_v46 = vsel %vm121_vm2, %v1877_v30, 0.0  ;;  %v2678_v34 = vsub.f32 %v1072_v31, %v1077_v39 }
0x2851   :  { %v381_v51 = vsel %vm380_vm9, %v379_v40, 0.0  ;;  %549 = vadd.xlane.f32.xlu0 %v548_v46 }
0x2852   :  { %382 = vst [vmem:[%s2763_s5] sm:$0x1] %v381_v51  ;;  %v1079_v35 = vmul.f32 1.442695, %v2678_v34 }
0x2854   :  { %1880 = vpow2.f32 %v1079_v35 }
0x2856   :  { %v1879_v13 = vpop.eup %1878 }
0x2857   :  { %v723_v48 = vsel %vm121_vm2, %v1879_v13, 0.0  ;;  %v2676_v52 = vpop.xlane.xlu1 %1259 }
0x2858   :  { %724 = vadd.xlane.f32.xlu2 %v723_v48 }
0x285f   :  { %v1435_v59 = vpop.xlane.xlu1 %1434 }
0x2860   :  { %v2684_v16 = vsub.f32 %v1430_v62, %v1435_v59 }
0x2865   :  { %555 = vrot.lane.b32.xlu0 %v2208_v5, %s1930_s20  ;;  %v1881_v5 = vpop.eup %1880 }
0x2866   :  { %v1081_v3 = vsel %vm121_vm2, %v1881_v5, 0.0 }
0x2870   :  { %730 = vrot.lane.b32.xlu2 %v2265_v60, %s1930_s20  ;;  %v1437_v60 = vmul.f32 1.442695, %v2684_v16 }
0x2872   :  { %1882 = vpow2.f32 %v1437_v60 }
0x2878   :  { %v1883_v53 = vpop.eup %1882 }
0x2879   :  { %v1439_v25 = vsel %vm121_vm2, %v1883_v53, 0.0 }
0x288f   :  { %901 = vmax.xlane.f32.xlu0 %v900_v1 }
0x2895   :  { %v1610_v26 = vpop.f32.mrf.mxu2 }
0x2896   :  { %v1611_v27 = vadd.f32 %v1610_v26, %v2627_v11 }
0x2897   :  { %1082 = vadd.xlane.f32.xlu0 %v1081_v3 }
0x2898   :  { %v1614_v9 = vsel %vm121_vm2, %v1611_v27, -inf }
0x2899   :  { %1615 = vmax.xlane.f32.xlu2 %v1614_v9 }
0x289d   :  { %v1612_v24 = vpop.f32.mrf.mxu2 }
0x28a1   :  { %1440 = vadd.xlane.f32.xlu2 %v1439_v25 }
0x28ab   :  { %1088 = vrot.lane.b32.xlu0 %v2379_v61, %s1930_s20 }
0x28b9   :  { %1271 = vrot.lane.b32.xlu2 %v2484_v21, %s1930_s20 }
0x28c1   :  { %1446 = vrot.lane.b32.xlu2 %v2571_v37, %s1930_s20 }
0x28c4   :  { %v550_v11 = vpop.xlane.xlu0 %549 }
0x28c5   :  { %1884 = vlog2.f32 %v550_v11 }
0x28cb   :  { %v725_v10 = vpop.xlane.xlu2 %724  ;;  %v1885_v58 = vpop.eup %1884 }
0x28cc   :  { %1886 = vlog2.f32 %v725_v10  ;;  %v552_v54 = vmul.f32 0.6931472, %v1885_v58 }
0x28ce   :  { %v553_v23 = vsub.f32 %v2660_v44, %v552_v54 }
0x28d0   :  { %v558_v21 = vsel %vm77_vm0, %v553_v23, %v2238_v15 }
0x28d2   :  { %v1887_v22 = vpop.eup %1886 }
0x28d3   :  { %v727_v32 = vmul.f32 0.6931472, %v1887_v22  ;;  %v731_v2 = vpop.permute.xlu2 %730 }
0x28d5   :  { %v728_v0 = vsub.f32 %v720_v45, %v727_v32 }
0x28d7   :  { %v733_v61 = vsel %vm77_vm0, %v728_v0, %v2295_v12  ;;  %v556_v31 = vpop.permute.xlu0 %555 }
0x28d8   :  { %v734_v37 = vsel %vm105_vm1, %v733_v61, %v731_v2  ;;  %v559_v4 = vsel %vm105_vm1, %v558_v21, %v556_v31 }
0x28d9   :  { %v735_v8 = vsel %vm380_vm9, %v734_v37, 0.0  ;;  %v560_v29 = vsel %vm380_vm9, %v559_v4, 0.0 }
0x28da   :  { %736 = vst [vmem:[%s2763_s5 + $0x2] sm:$0x1] %v735_v8 }
0x28db   :  { %561 = vst [vmem:[%s2763_s5 + $0x1] sm:$0x1] %v560_v29 }
0x2902   :  { %v902_v12 = vpop.xlane.xlu0 %901 }
0x2903   :  { %v903_v62 = vsub.f32 %v897_v56, %v902_v12 }
0x2905   :  { %v904_v15 = vmul.f32 1.442695, %v903_v62 }
0x2907   :  { %1888 = vpow2.f32 %v904_v15 }
0x290a   :  { %v1083_v38 = vpop.xlane.xlu0 %1082 }
0x290b   :  { %1890 = vlog2.f32 %v1083_v38 }
0x290c   :  { %v1616_v14 = vpop.xlane.xlu2 %1615 }
0x290d   :  { %v1889_v17 = vpop.eup %1888  ;;  %v1617_v47 = vsub.f32 %v1611_v27, %v1616_v14 }
0x290e   :  { %v906_v18 = vsel %vm121_vm2, %v1889_v17, 0.0 }
0x290f   :  { %v1618_v44 = vmul.f32 1.442695, %v1617_v47  ;;  %907 = vadd.xlane.f32.xlu1 %v906_v18 }
0x2911   :  { %1892 = vpow2.f32 %v1618_v44  ;;  %v1891_v42 = vpop.eup %1890 }
0x2912   :  { %v1085_v20 = vmul.f32 0.6931472, %v1891_v42 }
0x2914   :  { %v1441_v19 = vpop.xlane.xlu2 %1440  ;;  %v1086_v33 = vsub.f32 %v2678_v34, %v1085_v20 }
0x2915   :  { %1894 = vlog2.f32 %v1441_v19 }
0x2916   :  { %v1091_v40 = vsel %vm77_vm0, %v1086_v33, %v2409_v36  ;;  %v1261_v36 = vsub.f32 %v2652_v50, %v2676_v52 }
0x2917   :  { %v1893_v55 = vpop.eup %1892 }
0x2918   :  { %v1620_v45 = vsel %vm121_vm2, %v1893_v55, 0.0  ;;  %v1262_v59 = vmul.f32 1.442695, %v1261_v36 }
0x2919   :  { %1621 = vadd.xlane.f32.xlu0 %v1620_v45 }
0x291a   :  { %1896 = vpow2.f32 %v1262_v59 }
0x291b   :  { %v1895_v63 = vpop.eup %1894 }
0x291c   :  { %v1443_v30 = vmul.f32 0.6931472, %v1895_v63  ;;  %v1272_v49 = vpop.permute.xlu2 %1271 }
0x291d   :  { %v1089_v46 = vpop.permute.xlu0 %1088 }
0x291e   :  { %v1092_v51 = vsel %vm105_vm1, %v1091_v40, %v1089_v46  ;;  %v1444_v48 = vsub.f32 %v2684_v16, %v1443_v30 }
0x291f   :  { %v1093_v13 = vsel %vm380_vm9, %v1092_v51, 0.0 }
0x2920   :  { %1094 = vst [vmem:[%s2763_s5 + $0x4] sm:$0x1] %v1093_v13  ;;  %v1449_v39 = vsel %vm77_vm0, %v1444_v48, %v2594_v43  ;;  %v1897_v1 = vpop.eup %1896 }
0x2921   :  { %v1264_v43 = vsel %vm121_vm2, %v1897_v1, 0.0 }
0x2924   :  { %v1447_v34 = vpop.permute.xlu2 %1446 }
0x2925   :  { %v1450_v35 = vsel %vm105_vm1, %v1449_v39, %v1447_v34 }
0x2926   :  { %v1451_v56 = vsel %vm380_vm9, %v1450_v35, 0.0 }
0x2927   :  { %1452 = vst [vmem:[%s2763_s5 + $0x6] sm:$0x1] %v1451_v56 }
0x2928   :  { %913 = vrot.lane.b32.xlu1 %v2315_v57, %s1930_s20 }
0x2952   :  { %1265 = vadd.xlane.f32.xlu1 %v1264_v43 }
0x296b   :  { %1627 = vrot.lane.b32.xlu1 %v2610_v28, %s1930_s20 }
0x2982   :  { %v908_v16 = vpop.xlane.xlu1 %907 }
0x2983   :  { %1898 = vlog2.f32 %v908_v16 }
0x2989   :  { %v1899_v5 = vpop.eup %1898 }
0x298a   :  { %v910_v60 = vmul.f32 0.6931472, %v1899_v5 }
0x298c   :  { %v911_v26 = vsub.f32 %v903_v62, %v910_v60  ;;  %v1622_v28 = vpop.xlane.xlu0 %1621 }
0x298e   :  { %v916_v57 = vsel %vm77_vm0, %v911_v26, %v2352_v41 }
0x299a   :  { %v914_v27 = vpop.permute.xlu1 %913 }
0x299b   :  { %v917_v50 = vsel %vm105_vm1, %v916_v57, %v914_v27 }
0x299c   :  { %v918_v52 = vsel %vm380_vm9, %v917_v50, 0.0 }
0x299d   :  { %919 = vst [vmem:[%s2763_s5 + $0x3] sm:$0x1] %v918_v52 }
0x29c5   :  { %v1266_v3 = vpop.xlane.xlu1 %1265 }
0x29c6   :  { %1900 = vlog2.f32 %v1266_v3 }
0x29c7   :  { %1902 = vlog2.f32 %v1622_v28 }
0x29cc   :  { %v1901_v9 = vpop.eup %1900 }
0x29cd   :  { %v1268_v53 = vmul.f32 0.6931472, %v1901_v9  ;;  %v1903_v41 = vpop.eup %1902 }
0x29ce   :  { %v1624_v58 = vmul.f32 0.6931472, %v1903_v41 }
0x29cf   :  { %v1269_v24 = vsub.f32 %v1261_v36, %v1268_v53 }
0x29d0   :  { %v1625_v54 = vsub.f32 %v1617_v47, %v1624_v58 }
0x29d1   :  { %v1274_v25 = vsel %vm77_vm0, %v1269_v24, %v2549_v6 }
0x29d2   :  { %v1275_v11 = vsel %vm105_vm1, %v1274_v25, %v1272_v49  ;;  %v1630_v22 = vsel %vm77_vm0, %v1625_v54, %v2633_v7 }
0x29d3   :  { %v1276_v10 = vsel %vm380_vm9, %v1275_v11, 0.0 }
0x29d4   :  { %1277 = vst [vmem:[%s2763_s5 + $0x5] sm:$0x1] %v1276_v10 }
0x29dd   :  { %v1628_v23 = vpop.permute.xlu1 %1627 }
0x29de   :  { %v1631_v32 = vsel %vm105_vm1, %v1630_v22, %v1628_v23 }
0x29df   :  { %v1632_v0 = vsel %vm380_vm9, %v1631_v32, 0.0 }
0x29e0   :  { %1633 = vst [vmem:[%s2763_s5 + $0x7] sm:$0x1] %v1632_v0 }

</bundles_post_ra>
